<compile_context>
chip_gen: v7x
topology: tpu7x:2x2x1
jax: 0.10.0
libtpu: 0.0.40
codegen_flags: <defaults>
</compile_context>

<pallas_src>
import functools

import jax
import jax.numpy as jnp
from jax.experimental import pallas as pl
from jax.experimental.pallas import tpu as pltpu

D_IN, D_H1, D_H2, D_OUT = 2048, 512, 256, 256


def _round_up(x, m):
    return ((x + m - 1) // m) * m


def _mlp_kernel(x_ref, w1_ref, b1_ref, w2_ref, b2_ref, w3_ref, b3_ref, o_ref):
    # All three matmuls + bias + ReLU fused; h1/h2 never touch HBM.
    x = x_ref[...]  # bf16

    h1 = jnp.dot(x, w1_ref[...], preferred_element_type=jnp.float32)
    h1 = jnp.maximum(h1 + b1_ref[...], 0.0).astype(jnp.bfloat16)

    h2 = jnp.dot(h1, w2_ref[...], preferred_element_type=jnp.float32)
    h2 = jnp.maximum(h2 + b2_ref[...], 0.0).astype(jnp.bfloat16)

    h3 = jnp.dot(h2, w3_ref[...], preferred_element_type=jnp.float32)
    o_ref[...] = (h3 + b3_ref[...]).astype(o_ref.dtype)


def _select_config(B, block_m=None):
    """Pick batch tile and VMEM limit per TPU generation."""
    try:
        kind = jax.devices()[0].device_kind.lower()
    except Exception:  # pragma: no cover - defensive, e.g. interpret mode
        kind = ""

    if "v5" in kind:
        bm = 512 if block_m is None else block_m
        vmem = 32 << 20
    elif "v6" in kind:
        bm = 2048 if block_m is None else block_m
        vmem = 64 << 20
    else:
        # v7x (64 MiB/TC physical) and unknown chips: stay conservative.
        bm = 1024 if block_m is None else block_m
        vmem = 48 << 20
        # v7x has 2 TensorCores sharing the "parallel" axis: make sure the
        # grid has >=2 steps for non-trivial batches so neither TC idles.
        if "v7" in kind and 256 < B <= 2 * bm:
            bm = _round_up((B + 1) // 2, 256)

    # Tile: multiple of 16 (bf16 sublane packing), never larger than the
    # (rounded-up) batch.
    tm = min(bm, _round_up(B, 16))
    return tm, vmem


@functools.partial(jax.jit, static_argnames=("tm", "vmem_limit_bytes"))
def _projection_pallas(x, w1, b1, w2, b2, w3, b3, *, tm, vmem_limit_bytes):
    B = x.shape[0]
    grid = (pl.cdiv(B, tm),)

    def resident(shape):
        # Constant index_map + single buffer: weights/biases stay resident in
        # VMEM and are never re-DMA'd after the first grid step.
        return pl.BlockSpec(
            shape,
            lambda i: tuple(0 for _ in shape),
            pipeline_mode=pl.Buffered(1),
        )

    return pl.pallas_call(
        _mlp_kernel,
        out_shape=jax.ShapeDtypeStruct((B, D_OUT), jnp.float32),
        grid_spec=pltpu.PrefetchScalarGridSpec(
            num_scalar_prefetch=0,
            grid=grid,
            in_specs=[
                pl.BlockSpec((tm, D_IN), lambda i: (i, 0)),
                resident((D_IN, D_H1)),
                resident((1, D_H1)),
                resident((D_H1, D_H2)),
                resident((1, D_H2)),
                resident((D_H2, D_OUT)),
                resident((1, D_OUT)),
            ],
            out_specs=pl.BlockSpec((tm, D_OUT), lambda i: (i, 0)),
        ),
        compiler_params=pltpu.CompilerParams(
            dimension_semantics=("parallel",),
            vmem_limit_bytes=vmem_limit_bytes,
        ),
    )(x, w1, b1, w2, b2, w3, b3)


def projection_forward(x, params, block_m=None):
    """x: [B, 2048] bfloat16 -> [B, 256] float32."""
    w1, b1, w2, b2, w3, b3 = params
    tm, vmem = _select_config(x.shape[0], block_m)
    return _projection_pallas(
        x, w1, b1, w2, b2, w3, b3, tm=tm, vmem_limit_bytes=vmem
    )


def init_params(key):
    """Kaiming-uniform-ish init matching nn.Linear shapes.

    Weights are stored as bf16 [in, out]; biases stay f32 (tiny, added into the
    f32 accumulator inside the kernel).
    """
    ks = jax.random.split(key, 6)

    def linear(kw, kb, fan_in, fan_out):
        bound = 1.0 / jnp.sqrt(fan_in)
        w = jax.random.uniform(kw, (fan_in, fan_out), jnp.float32, -bound, bound)
        b = jax.random.uniform(kb, (1, fan_out), jnp.float32, -bound, bound)
        return w.astype(jnp.bfloat16), b

    w1, b1 = linear(ks[0], ks[1], D_IN, D_H1)
    w2, b2 = linear(ks[2], ks[3], D_H1, D_H2)
    w3, b3 = linear(ks[4], ks[5], D_H2, D_OUT)
    return (w1, b1, w2, b2, w3, b3)


def reference_forward(x, params):
    """Pure-JAX reference with the same bf16-compute / f32-accumulate recipe."""
    w1, b1, w2, b2, w3, b3 = params
    h = jnp.dot(x, w1, preferred_element_type=jnp.float32)
    h = jnp.maximum(h + b1, 0.0).astype(jnp.bfloat16)
    h = jnp.dot(h, w2, preferred_element_type=jnp.float32)
    h = jnp.maximum(h + b2, 0.0).astype(jnp.bfloat16)
    return jnp.dot(h, w3, preferred_element_type=jnp.float32) + b3


if __name__ == "__main__":
    key = jax.random.PRNGKey(0)
    k_x, k_p = jax.random.split(key)

    batch = 8  # small demo batch; feature dims fixed by the module (2048 -> 256)
    x = jax.random.normal(k_x, (batch, D_IN), jnp.float32).astype(jnp.bfloat16)
    params = init_params(k_p)

    y = projection_forward(x, params)
    y = jax.block_until_ready(y)

    y_ref = reference_forward(x, params)
    assert y.shape == (batch, D_OUT)
    assert jnp.allclose(y, y_ref, atol=2e-2, rtol=2e-2), "mismatch vs reference"

    print("KERNEL_OK")
</pallas_src>

<mosaic_0001>
module attributes {stable_mosaic.version = 11 : i64} {
  func.func @_mlp_kernel(%arg0: i32, %arg1: memref<16x2048xbf16, #tpu.memory_space<vmem>>, %arg2: memref<2048x512xbf16, #tpu.memory_space<vmem>>, %arg3: memref<1x512xf32, #tpu.memory_space<vmem>>, %arg4: memref<512x256xbf16, #tpu.memory_space<vmem>>, %arg5: memref<1x256xf32, #tpu.memory_space<vmem>>, %arg6: memref<256x256xbf16, #tpu.memory_space<vmem>>, %arg7: memref<1x256xf32, #tpu.memory_space<vmem>>, %arg8: memref<16x256xf32, #tpu.memory_space<vmem>>) attributes {dimension_semantics = [#tpu.dimension_semantics<parallel>], iteration_bounds = array<i64: 1>, scalar_prefetch = 0 : i64, scratch_operands = 0 : i64, tpu.core_type = #tpu.core_type<tc>, window_params = [{transform_indices = @transform_0, window_bounds = array<i64: 16, 2048>}, {pipeline_mode = #tpu.pipeline_mode<synchronous>, transform_indices = @transform_1, window_bounds = array<i64: 2048, 512>}, {pipeline_mode = #tpu.pipeline_mode<synchronous>, transform_indices = @transform_2, window_bounds = array<i64: 1, 512>}, {pipeline_mode = #tpu.pipeline_mode<synchronous>, transform_indices = @transform_3, window_bounds = array<i64: 512, 256>}, {pipeline_mode = #tpu.pipeline_mode<synchronous>, transform_indices = @transform_4, window_bounds = array<i64: 1, 256>}, {pipeline_mode = #tpu.pipeline_mode<synchronous>, transform_indices = @transform_5, window_bounds = array<i64: 256, 256>}, {pipeline_mode = #tpu.pipeline_mode<synchronous>, transform_indices = @transform_6, window_bounds = array<i64: 1, 256>}, {transform_indices = @transform_7, window_bounds = array<i64: 16, 256>}]} {
    %c0 = arith.constant 0 : index
    %c0_0 = arith.constant 0 : index
    %0 = vector.load %arg1[%c0, %c0_0] : memref<16x2048xbf16, #tpu.memory_space<vmem>>, vector<16x2048xbf16>
    %c0_1 = arith.constant 0 : index
    %c0_2 = arith.constant 0 : index
    %1 = vector.load %arg2[%c0_1, %c0_2] : memref<2048x512xbf16, #tpu.memory_space<vmem>>, vector<2048x512xbf16>
    %cst = arith.constant dense<0.000000e+00> : vector<16x512xf32>
    %2 = tpu.matmul %0, %1, %cst {dimension_numbers = #tpu.dot_dimension_numbers<[1], [0], [0], [1], [0, 0, 1, 1], [], []>} : vector<16x2048xbf16>, vector<2048x512xbf16>, vector<16x512xf32> -> vector<16x512xf32>
    %c0_3 = arith.constant 0 : index
    %c0_4 = arith.constant 0 : index
    %3 = vector.load %arg3[%c0_3, %c0_4] : memref<1x512xf32, #tpu.memory_space<vmem>>, vector<1x512xf32>
    %4 = vector.broadcast %3 : vector<1x512xf32> to vector<16x512xf32>
    %5 = arith.addf %2, %4 : vector<16x512xf32>
    %cst_5 = arith.constant 0.000000e+00 : f32
    %6 = vector.broadcast %cst_5 : f32 to vector<16x512xf32>
    %7 = arith.maximumf %5, %6 : vector<16x512xf32>
    %8 = arith.truncf %7 : vector<16x512xf32> to vector<16x512xbf16>
    %c0_6 = arith.constant 0 : index
    %c0_7 = arith.constant 0 : index
    %9 = vector.load %arg4[%c0_6, %c0_7] : memref<512x256xbf16, #tpu.memory_space<vmem>>, vector<512x256xbf16>
    %cst_8 = arith.constant dense<0.000000e+00> : vector<16x256xf32>
    %10 = tpu.matmul %8, %9, %cst_8 {dimension_numbers = #tpu.dot_dimension_numbers<[1], [0], [0], [1], [0, 0, 1, 1], [], []>} : vector<16x512xbf16>, vector<512x256xbf16>, vector<16x256xf32> -> vector<16x256xf32>
    %c0_9 = arith.constant 0 : index
    %c0_10 = arith.constant 0 : index
    %11 = vector.load %arg5[%c0_9, %c0_10] : memref<1x256xf32, #tpu.memory_space<vmem>>, vector<1x256xf32>
    %12 = vector.broadcast %11 : vector<1x256xf32> to vector<16x256xf32>
    %13 = arith.addf %10, %12 : vector<16x256xf32>
    %cst_11 = arith.constant 0.000000e+00 : f32
    %14 = vector.broadcast %cst_11 : f32 to vector<16x256xf32>
    %15 = arith.maximumf %13, %14 : vector<16x256xf32>
    %16 = arith.truncf %15 : vector<16x256xf32> to vector<16x256xbf16>
    %c0_12 = arith.constant 0 : index
    %c0_13 = arith.constant 0 : index
    %17 = vector.load %arg6[%c0_12, %c0_13] : memref<256x256xbf16, #tpu.memory_space<vmem>>, vector<256x256xbf16>
    %cst_14 = arith.constant dense<0.000000e+00> : vector<16x256xf32>
    %18 = tpu.matmul %16, %17, %cst_14 {dimension_numbers = #tpu.dot_dimension_numbers<[1], [0], [0], [1], [0, 0, 1, 1], [], []>} : vector<16x256xbf16>, vector<256x256xbf16>, vector<16x256xf32> -> vector<16x256xf32>
    %c0_15 = arith.constant 0 : index
    %c0_16 = arith.constant 0 : index
    %19 = vector.load %arg7[%c0_15, %c0_16] : memref<1x256xf32, #tpu.memory_space<vmem>>, vector<1x256xf32>
    %20 = vector.broadcast %19 : vector<1x256xf32> to vector<16x256xf32>
    %21 = arith.addf %18, %20 : vector<16x256xf32>
    %c0_17 = arith.constant 0 : index
    %c0_18 = arith.constant 0 : index
    %22 = vector.load %arg8[%c0_17, %c0_18] : memref<16x256xf32, #tpu.memory_space<vmem>>, vector<16x256xf32>
    tpu.vector_store %arg8[%c0_17, %c0_18], %21 {strides = array<i32>} : memref<16x256xf32, #tpu.memory_space<vmem>>, vector<16x256xf32>,
    return
  }
  func.func @transform_0(%arg0: i32) -> (i32, i32) {
    %c0_i32 = arith.constant 0 : i32
    %c0_i32_0 = arith.constant 0 : i32
    return %arg0, %c0_i32 : i32, i32
  }
  func.func @transform_1(%arg0: i32) -> (i32, i32) {
    %c0_i32 = arith.constant 0 : i32
    %c0_i32_0 = arith.constant 0 : i32
    %c0_i32_1 = arith.constant 0 : i32
    return %c0_i32, %c0_i32_0 : i32, i32
  }
  func.func @transform_2(%arg0: i32) -> (i32, i32) {
    %c0_i32 = arith.constant 0 : i32
    %c0_i32_0 = arith.constant 0 : i32
    %c0_i32_1 = arith.constant 0 : i32
    return %c0_i32, %c0_i32_0 : i32, i32
  }
  func.func @transform_3(%arg0: i32) -> (i32, i32) {
    %c0_i32 = arith.constant 0 : i32
    %c0_i32_0 = arith.constant 0 : i32
    %c0_i32_1 = arith.constant 0 : i32
    return %c0_i32, %c0_i32_0 : i32, i32
  }
  func.func @transform_4(%arg0: i32) -> (i32, i32) {
    %c0_i32 = arith.constant 0 : i32
    %c0_i32_0 = arith.constant 0 : i32
    %c0_i32_1 = arith.constant 0 : i32
    return %c0_i32, %c0_i32_0 : i32, i32
  }
  func.func @transform_5(%arg0: i32) -> (i32, i32) {
    %c0_i32 = arith.constant 0 : i32
    %c0_i32_0 = arith.constant 0 : i32
    %c0_i32_1 = arith.constant 0 : i32
    return %c0_i32, %c0_i32_0 : i32, i32
  }
  func.func @transform_6(%arg0: i32) -> (i32, i32) {
    %c0_i32 = arith.constant 0 : i32
    %c0_i32_0 = arith.constant 0 : i32
    %c0_i32_1 = arith.constant 0 : i32
    return %c0_i32, %c0_i32_0 : i32, i32
  }
  func.func @transform_7(%arg0: i32) -> (i32, i32) {
    %c0_i32 = arith.constant 0 : i32
    %c0_i32_0 = arith.constant 0 : i32
    return %arg0, %c0_i32 : i32, i32
  }
}

</mosaic_0001>

<bundles_post_ra>
// kernel: _projection_pallas.1
= control target key start
LH: loop header
LB: loop body
LE: loop exit
PB: predicated region body
PF: predicated region fallthrough
CT: control target
= control target key end

     0   :  { %12 = vsyncpa [#allocation3], 0  ;;  %s6806_s0 = inlined_call_operand.hbm [shape: bf16[8,2048], index: 0, kind: input, shape index: {}]   ;;  %s6807_s1 = inlined_call_operand.hbm [shape: bf16[2048,512], index: 1, kind: input, shape index: {}]   ;;  %s6808_s2 = inlined_call_operand.hbm [shape: f32[1,512], index: 2, kind: input, shape index: {}]   ;;  %s6809_s3 = inlined_call_operand.hbm [shape: bf16[512,256], index: 3, kind: input, shape index: {}]   ;;  %s6810_s4 = inlined_call_operand.hbm [shape: f32[1,256], index: 4, kind: input, shape index: {}]   ;;  %s6811_s5 = inlined_call_operand.hbm [shape: bf16[256,256], index: 5, kind: input, shape index: {}]   ;;  %s6812_s6 = inlined_call_operand.hbm [shape: f32[1,256], index: 6, kind: input, shape index: {}]   ;;  %s6813_s7 = inlined_call_operand.hbm [shape: f32[8,256], index: 7, kind: output, shape index: {}]  }
   0x1   :  { %13 = vsyncpa [#allocation6], 0 }
   0x2   :  { %14 = vsyncpa [#allocation9], 0 }
   0x3   :  { %15 = vsyncpa [#allocation12], 0 }
   0x4   :  { %16 = vsyncpa [#allocation4], 0 }
   0x5   :  { %21 = vsyncadd [#allocation3], 1024  ;;  %s6573_s24 = smov [#allocation5]   ;;  %s6387_s28 = scalar_lea.hbm %s6807_s1, 65536 }
   0x6   :  { %s34_s25 = sshll.u32 %s6573_s24, 4  ;;  %p6388_p0 = scmp.ne.s32.totalorder %s6807_s1, %s6387_s28  ;;  %s35_s25 = int_to_ptr.vmem [resolvable:$true] %s34_s25 }
   0x7   :  { %p6391_p1 = scmp.lt.u32.totalorder %s6387_s28, %s6807_s1 }
   0x9   :  { %p6393_p2 = pnand %p6391_p1, %p6388_p0 }
   0xb   :  { %6396 = shalt.err (!%p6393_p2)
}
   0xc   :  { %s6397_s10 = scalar_lea.vmem %s35_s25, 65536  ;;  %p6402_p4 = scmp.lt.s32.totalorder %s35_s25, %s35_s25 }
   0xd   :  { %p6398_p3 = scmp.ne.s32.totalorder %s35_s25, %s6397_s10  ;;  %p6403_p5 = scmp.lt.s32.totalorder %s6397_s10, %s6397_s10 }
   0xf   :  { %p6404_p6 = por %p6403_p5, %p6402_p4 }
  0x11   :  { %p6405_p7 = pnand %p6404_p6, %p6398_p3 }
  0x13   :  { %6408 = shalt.err (!%p6405_p7)
}
  0x14   :  { %s6574_s11 = smov 256   ;;  %s6575_s12 = smov 16  }
  0x15   :  { %40 = dma.hbm_to_vmem [thread:$0]  %s6807_s1, 65536, %s35_s25, [#allocation6], %s6574_s11, %s6574_s11, %s6575_s12  }
  0x16   :  { %s6576_s15 = smov [#allocation8]   ;;  %s6409_s19 = scalar_lea.hbm %s6809_s3, 8192 }
  0x17   :  { %s56_s16 = sshll.u32 %s6576_s15, 4  ;;  %p6410_p8 = scmp.ne.s32.totalorder %s6809_s3, %s6409_s19  ;;  %s57_s16 = int_to_ptr.vmem [resolvable:$true] %s56_s16 }
  0x18   :  { %p6413_p9 = scmp.lt.u32.totalorder %s6409_s19, %s6809_s3 }
  0x1a   :  { %p6415_p10 = pnand %p6413_p9, %p6410_p8 }
  0x1c   :  { %6418 = shalt.err (!%p6415_p10)
}
  0x1d   :  { %s6419_s24 = scalar_lea.vmem %s57_s16, 8192  ;;  %p6424_p12 = scmp.lt.s32.totalorder %s57_s16, %s57_s16 }
  0x1e   :  { %p6420_p11 = scmp.ne.s32.totalorder %s57_s16, %s6419_s24  ;;  %p6425_p13 = scmp.lt.s32.totalorder %s6419_s24, %s6419_s24 }
  0x20   :  { %p6426_p0 = por %p6425_p13, %p6424_p12 }
  0x22   :  { %p6427_p1 = pnand %p6426_p0, %p6420_p11 }
  0x24   :  { %6430 = shalt.err (!%p6427_p1)
}
  0x25   :  { %s6577_s1 = smov 128   ;;  %s6578_s25 = smov 8  }
  0x26   :  { %62 = dma.hbm_to_vmem [thread:$0]  %s6809_s3, 8192, %s57_s16, [#allocation9], %s6577_s1, %s6577_s1, %s6578_s25  }
  0x27   :  { %s6579_s28 = smov [#allocation11]   ;;  %s6580_s30 = smov [#allocation2]  }
  0x28   :  { %s78_s29 = sshll.u32 %s6579_s28, 4  ;;  %s22_s8 = sshll.u32 %s6580_s30, 4  ;;  %s79_s29 = int_to_ptr.vmem [resolvable:$true] %s78_s29  ;;  %s6654_s8 = int_to_ptr.vmem [resolvable:$true] %s22_s8 }
  0x29   :  { %s6431_s13 = scalar_lea.hbm %s6811_s5, 4096 }
  0x2a   :  { %p6432_p2 = scmp.ne.s32.totalorder %s6811_s5, %s6431_s13  ;;  %p6435_p3 = scmp.lt.u32.totalorder %s6431_s13, %s6811_s5 }
  0x2c   :  { %p6437_p4 = pnand %p6435_p3, %p6432_p2 }
  0x2e   :  { %6440 = shalt.err (!%p6437_p4)
}
  0x2f   :  { %s6441_s3 = scalar_lea.vmem %s79_s29, 4096  ;;  %p6446_p6 = scmp.lt.s32.totalorder %s79_s29, %s79_s29 }
  0x30   :  { %p6442_p5 = scmp.ne.s32.totalorder %s79_s29, %s6441_s3  ;;  %p6447_p7 = scmp.lt.s32.totalorder %s6441_s3, %s6441_s3 }
  0x32   :  { %p6448_p8 = por %p6447_p7, %p6446_p6 }
  0x34   :  { %p6449_p9 = pnand %p6448_p8, %p6442_p5 }
  0x36   :  { %6452 = shalt.err (!%p6449_p9)
}
  0x37   :  { %84 = dma.hbm_to_vmem [thread:$0]  %s6811_s5, 4096, %s79_s29, [#allocation12], %s6577_s1, %s6577_s1, %s6578_s25  }
  0x38   :  { %s6453_s22 = scalar_lea.hbm %s6806_s0, 1024 }
  0x39   :  { %p6454_p10 = scmp.ne.s32.totalorder %s6806_s0, %s6453_s22  ;;  %p6457_p11 = scmp.lt.u32.totalorder %s6453_s22, %s6806_s0 }
  0x3b   :  { %p6459_p12 = pnand %p6457_p11, %p6454_p10 }
  0x3d   :  { %6462 = shalt.err (!%p6459_p12)
}
  0x3e   :  { %s6463_s28 = scalar_lea.vmem %s6654_s8, 1024  ;;  %s6467_s5 = scalar_lea.vmem %s6654_s8, 2048 }
  0x3f   :  { %p6464_p13 = scmp.ne.s32.totalorder %s6654_s8, %s6463_s28  ;;  %p6468_p0 = scmp.lt.s32.totalorder %s6654_s8, %s6654_s8 }
  0x40   :  { %p6469_p1 = scmp.lt.s32.totalorder %s6467_s5, %s6463_s28 }
  0x42   :  { %p6470_p2 = por %p6469_p1, %p6468_p0 }
  0x44   :  { %p6471_p3 = pnand %p6470_p2, %p6464_p13 }
  0x46   :  { %6474 = shalt.err (!%p6471_p3)
}
  0x47   :  { %s6581_s1 = smov 1024   ;;  %s6582_s25 = smov 64  }
  0x48   :  { %28 = dma.hbm_to_vmem [thread:$0]  %s6806_s0, 1024, %s6654_s8, [#allocation3], %s6581_s1, %s6581_s1, %s6582_s25  }
  0x49   :  { %s6583_s9 = smov [#allocation7]   ;;  %s6584_s13 = smov [#allocation10]  }
  0x4a   :  { %s47_s10 = sshll.u32 %s6583_s9, 4  ;;  %s69_s14 = sshll.u32 %s6584_s13, 4  ;;  %s48_s10 = int_to_ptr.vmem [resolvable:$true] %s47_s10  ;;  %s70_s14 = int_to_ptr.vmem [resolvable:$true] %s69_s14 }
  0x4b   :  { %s6475_s18 = scalar_lea.hbm %s6808_s2, 64 }
  0x4c   :  { %p6476_p4 = scmp.ne.s32.totalorder %s6808_s2, %s6475_s18  ;;  %p6479_p5 = scmp.lt.u32.totalorder %s6475_s18, %s6808_s2 }
  0x4e   :  { %p6481_p6 = pnand %p6479_p5, %p6476_p4 }
  0x50   :  { %6484 = shalt.err (!%p6481_p6)
}
  0x51   :  { %s6485_s0 = scalar_lea.vmem %s48_s10, 64  ;;  %p6490_p8 = scmp.lt.s32.totalorder %s48_s10, %s48_s10 }
  0x52   :  { %p6486_p7 = scmp.ne.s32.totalorder %s48_s10, %s6485_s0  ;;  %p6491_p9 = scmp.lt.s32.totalorder %s6485_s0, %s6485_s0 }
  0x54   :  { %p6492_p10 = por %p6491_p9, %p6490_p8 }
  0x56   :  { %p6493_p11 = pnand %p6492_p10, %p6486_p7 }
  0x58   :  { %6496 = shalt.err (!%p6493_p11)
}
  0x59   :  { %50 = dma.hbm_to_vmem [thread:$0]  %s6808_s2, 64, %s48_s10, [#allocation6]  }
  0x5a   :  { %s6497_s24 = scalar_lea.hbm %s6810_s4, 32 }
  0x5b   :  { %p6498_p12 = scmp.ne.s32.totalorder %s6810_s4, %s6497_s24  ;;  %p6501_p13 = scmp.lt.u32.totalorder %s6497_s24, %s6810_s4 }
  0x5d   :  { %p6503_p0 = pnand %p6501_p13, %p6498_p12 }
  0x5f   :  { %6506 = shalt.err (!%p6503_p0)
}
  0x60   :  { %s6507_s1 = scalar_lea.vmem %s70_s14, 32  ;;  %p6512_p2 = scmp.lt.s32.totalorder %s70_s14, %s70_s14 }
  0x61   :  { %p6508_p1 = scmp.ne.s32.totalorder %s70_s14, %s6507_s1  ;;  %p6513_p3 = scmp.lt.s32.totalorder %s6507_s1, %s6507_s1 }
  0x63   :  { %p6514_p4 = por %p6513_p3, %p6512_p2 }
  0x65   :  { %p6515_p5 = pnand %p6514_p4, %p6508_p1 }
  0x67   :  { %6518 = shalt.err (!%p6515_p5)
}
  0x68   :  { %72 = dma.hbm_to_vmem [thread:$0]  %s6810_s4, 32, %s70_s14, [#allocation9]  }
  0x69   :  { %s6585_s29 = smov [#allocation13]   ;;  %s6519_s13 = scalar_lea.hbm %s6812_s6, 32 }
  0x6a   :  { %s91_s30 = sshll.u32 %s6585_s29, 4  ;;  %p6520_p6 = scmp.ne.s32.totalorder %s6812_s6, %s6519_s13  ;;  %s92_s30 = int_to_ptr.vmem [resolvable:$true] %s91_s30 }
  0x6b   :  { %p6523_p7 = scmp.lt.u32.totalorder %s6519_s13, %s6812_s6 }
  0x6d   :  { %p6525_p8 = pnand %p6523_p7, %p6520_p6 }
  0x6f   :  { %6528 = shalt.err (!%p6525_p8)
}
  0x70   :  { %s6529_s16 = scalar_lea.vmem %s92_s30, 32  ;;  %p6534_p10 = scmp.lt.s32.totalorder %s92_s30, %s92_s30 }
  0x71   :  { %p6530_p9 = scmp.ne.s32.totalorder %s92_s30, %s6529_s16  ;;  %p6535_p11 = scmp.lt.s32.totalorder %s6529_s16, %s6529_s16 }
  0x73   :  { %p6536_p12 = por %p6535_p11, %p6534_p10 }
  0x75   :  { %p6537_p13 = pnand %p6536_p12, %p6530_p9 }
  0x77   :  { %6540 = shalt.err (!%p6537_p13)
}
  0x78   :  { %94 = dma.hbm_to_vmem [thread:$0]  %s6812_s6, 32, %s92_s30, [#allocation12]  }
  0x79   :  { %6563 = dma.done.wait [#allocation3], 2048  }
  0x7a   :  { %6564 = vsyncadd [#allocation3], 4294965248 }
  0x7b   :  { %6565 = dma.done.wait [#allocation6], 65600  }
  0x7c   :  { %6566 = vsyncadd [#allocation6], 4294901696 }
  0x7d   :  { %6567 = dma.done.wait [#allocation9], 8224  }
  0x7e   :  { %6568 = vsyncadd [#allocation9], 4294959072 }
  0x7f   :  { %6569 = dma.done.wait [#allocation12], 4128  }
  0x80   :  { %6570 = vsyncadd [#allocation12], 4294963168  ;;  %v5475_v0 = vld [vmem:[#allocation5 + $0x4] ss:$16 sps:$4 sm:$0xff]   ;;  %v5477_v1 = vld [vmem:[#allocation5 + $0xc] ss:$16 sps:$4 sm:$0xff]  }
  0x81   :  { %3306 = vmatprep.subr.bf16.mxu0 %v5475_v0  ;;  %v5479_v2 = vld [vmem:[#allocation5] ss:$16 sps:$4 sm:$0xff]   ;;  %v5480_v3 = vld [vmem:[#allocation5 + $0x8] ss:$16 sps:$4 sm:$0xff]   ;;  %3650 = vmatprep.subr.bf16.mxu1 %v5477_v1  ;;  %v5481_v4 = vld [vmem:[#allocation5 + $0x24] ss:$16 sps:$4 sm:$0xff]  }
  0x82   :  { %3307 = vmatpush1.bf16.msra.mxu0 %v5479_v2  ;;  %3651 = vmatpush1.bf16.msra.mxu1 %v5480_v3  ;;  %v5483_v5 = vld [vmem:[#allocation5 + $0x2c] ss:$16 sps:$4 sm:$0xff]   ;;  %v5485_v6 = vld [vmem:[#allocation5 + $0x20] ss:$16 sps:$4 sm:$0xff]   ;;  %v5486_v7 = vld [vmem:[#allocation5 + $0x28] ss:$16 sps:$4 sm:$0xff]  }
  0x83   :  { %3308 = vmatprep.subr.bf16.mxu0 %v5481_v4  ;;  %3652 = vmatprep.subr.bf16.mxu1 %v5483_v5  ;;  %v5487_v8 = vld [vmem:[#allocation5 + $0x44] ss:$16 sps:$4 sm:$0xff]   ;;  %v5489_v9 = vld [vmem:[#allocation5 + $0x4c] ss:$16 sps:$4 sm:$0xff]   ;;  %v5491_v10 = vld [vmem:[#allocation5 + $0x40] ss:$16 sps:$4 sm:$0xff]  }
  0x84   :  { %v5492_v11 = vld [vmem:[#allocation5 + $0x48] ss:$16 sps:$4 sm:$0xff]   ;;  %v5493_v12 = vld [vmem:[#allocation5 + $0x64] ss:$16 sps:$4 sm:$0xff]   ;;  %v5495_v13 = vld [vmem:[#allocation5 + $0x6c] ss:$16 sps:$4 sm:$0xff]  }
  0x85   :  { %v5497_v14 = vld [vmem:[#allocation5 + $0x60] ss:$16 sps:$4 sm:$0xff]   ;;  %v5498_v15 = vld [vmem:[#allocation5 + $0x68] ss:$16 sps:$4 sm:$0xff]   ;;  %v5499_v16 = vld [vmem:[#allocation5 + $0x84] ss:$16 sps:$4 sm:$0xff]  }
  0x86   :  { %3309 = vmatpush1.bf16.msra.mxu0 %v5485_v6  ;;  %3653 = vmatpush1.bf16.msra.mxu1 %v5486_v7  ;;  %v5501_v17 = vld [vmem:[#allocation5 + $0x8c] ss:$16 sps:$4 sm:$0xff]   ;;  %v5503_v18 = vld [vmem:[#allocation5 + $0x80] ss:$16 sps:$4 sm:$0xff]   ;;  %v5504_v19 = vld [vmem:[#allocation5 + $0x88] ss:$16 sps:$4 sm:$0xff]  }
  0x87   :  { %3310 = vmatprep.subr.bf16.mxu0 %v5487_v8  ;;  %3654 = vmatprep.subr.bf16.mxu1 %v5489_v9  ;;  %v5505_v20 = vld [vmem:[#allocation5 + $0xa4] ss:$16 sps:$4 sm:$0xff]   ;;  %v5507_v21 = vld [vmem:[#allocation5 + $0xac] ss:$16 sps:$4 sm:$0xff]   ;;  %v5509_v22 = vld [vmem:[#allocation5 + $0xa0] ss:$16 sps:$4 sm:$0xff]  }
  0x88   :  { %v5510_v23 = vld [vmem:[#allocation5 + $0xa8] ss:$16 sps:$4 sm:$0xff]   ;;  %v5511_v24 = vld [vmem:[#allocation5 + $0xc4] ss:$16 sps:$4 sm:$0xff]   ;;  %v5513_v25 = vld [vmem:[#allocation5 + $0xcc] ss:$16 sps:$4 sm:$0xff]  }
  0x89   :  { %v5515_v26 = vld [vmem:[#allocation5 + $0xc0] ss:$16 sps:$4 sm:$0xff]   ;;  %v5516_v27 = vld [vmem:[#allocation5 + $0xc8] ss:$16 sps:$4 sm:$0xff]   ;;  %v5517_v28 = vld [vmem:[#allocation5 + $0xe4] ss:$16 sps:$4 sm:$0xff]  }
  0x8a   :  { %3311 = vmatpush1.bf16.msra.mxu0 %v5491_v10  ;;  %3655 = vmatpush1.bf16.msra.mxu1 %v5492_v11  ;;  %v5519_v29 = vld [vmem:[#allocation5 + $0xec] ss:$16 sps:$4 sm:$0xff]   ;;  %v5521_v30 = vld [vmem:[#allocation5 + $0xe0] ss:$16 sps:$4 sm:$0xff]   ;;  %v5522_v31 = vld [vmem:[#allocation5 + $0xe8] ss:$16 sps:$4 sm:$0xff]  }
  0x8b   :  { %3312 = vmatprep.subr.bf16.mxu0 %v5493_v12  ;;  %3656 = vmatprep.subr.bf16.mxu1 %v5495_v13  ;;  %v5523_v32 = vld [vmem:[#allocation5 + $0x104] ss:$16 sps:$4 sm:$0xff]   ;;  %v5525_v33 = vld [vmem:[#allocation5 + $0x10c] ss:$16 sps:$4 sm:$0xff]   ;;  %v5527_v34 = vld [vmem:[#allocation5 + $0x100] ss:$16 sps:$4 sm:$0xff]  }
  0x8c   :  { %v5528_v35 = vld [vmem:[#allocation5 + $0x108] ss:$16 sps:$4 sm:$0xff]   ;;  %v5529_v36 = vld [vmem:[#allocation5 + $0x124] ss:$16 sps:$4 sm:$0xff]   ;;  %v5531_v37 = vld [vmem:[#allocation5 + $0x12c] ss:$16 sps:$4 sm:$0xff]  }
  0x8d   :  { %v5533_v38 = vld [vmem:[#allocation5 + $0x120] ss:$16 sps:$4 sm:$0xff]   ;;  %v5534_v39 = vld [vmem:[#allocation5 + $0x128] ss:$16 sps:$4 sm:$0xff]   ;;  %v5535_v40 = vld [vmem:[#allocation5 + $0x144] ss:$16 sps:$4 sm:$0xff]  }
  0x8e   :  { %3313 = vmatpush1.bf16.msra.mxu0 %v5497_v14  ;;  %3657 = vmatpush1.bf16.msra.mxu1 %v5498_v15  ;;  %v5537_v41 = vld [vmem:[#allocation5 + $0x14c] ss:$16 sps:$4 sm:$0xff]   ;;  %v5539_v42 = vld [vmem:[#allocation5 + $0x140] ss:$16 sps:$4 sm:$0xff]   ;;  %v5540_v43 = vld [vmem:[#allocation5 + $0x148] ss:$16 sps:$4 sm:$0xff]  }
  0x8f   :  { %3314 = vmatprep.subr.bf16.mxu0 %v5499_v16  ;;  %3658 = vmatprep.subr.bf16.mxu1 %v5501_v17  ;;  %v5541_v44 = vld [vmem:[#allocation5 + $0x164] ss:$16 sps:$4 sm:$0xff]   ;;  %v5543_v45 = vld [vmem:[#allocation5 + $0x16c] ss:$16 sps:$4 sm:$0xff]   ;;  %v5545_v48 = vld [vmem:[#allocation5 + $0x160] ss:$16 sps:$4 sm:$0xff]  }
  0x90   :  { %v116_v46 = vld [vmem:[#allocation2] sm:$0xff]  ;;  %v5546_v49 = vld [vmem:[#allocation5 + $0x168] ss:$16 sps:$4 sm:$0xff]   ;;  %v5549_v52 = vld [vmem:[#allocation5 + $0x18c] ss:$16 sps:$4 sm:$0xff]  }
  0x91   :  { %v124_v47 = vld [vmem:[#allocation2 + $0x40] sm:$0xff]  ;;  %v5552_v54 = vld [vmem:[#allocation5 + $0x188] ss:$16 sps:$4 sm:$0xff]   ;;  %v5555_v56 = vld [vmem:[#allocation5 + $0x1ac] ss:$16 sps:$4 sm:$0xff]  }
  0x92   :  { %3315 = vmatpush1.bf16.msra.mxu0 %v5503_v18  ;;  %3659 = vmatpush1.bf16.msra.mxu1 %v5504_v19  ;;  %v4766_v50 = vcombine.high %v116_v46, %v124_v47  ;;  %v5547_v51 = vld [vmem:[#allocation5 + $0x184] ss:$16 sps:$4 sm:$0xff]   ;;  %v5551_v53 = vld [vmem:[#allocation5 + $0x180] ss:$16 sps:$4 sm:$0xff]   ;;  %v5558_v58 = vld [vmem:[#allocation5 + $0x1a8] ss:$16 sps:$4 sm:$0xff]   ;;  %v4765_v5 = vcombine.low %v116_v46, %v124_v47 }
  0x93   :  { %3316 = vmatprep.subr.bf16.mxu0 %v5505_v20  ;;  %3660 = vmatprep.subr.bf16.mxu1 %v5507_v21  ;;  %v5553_v55 = vld [vmem:[#allocation5 + $0x1a4] ss:$16 sps:$4 sm:$0xff]   ;;  %v5557_v57 = vld [vmem:[#allocation5 + $0x1a0] ss:$16 sps:$4 sm:$0xff]   ;;  %v5561_v60 = vld [vmem:[#allocation5 + $0x1cc] ss:$16 sps:$4 sm:$0xff]  }
  0x94   :  { %3338 = vmatprep.mubr.bf16.mxu0 %v4766_v50  ;;  %3682 = vmatprep.mubr.bf16.mxu1 %v4766_v50  ;;  %v5559_v59 = vld [vmem:[#allocation5 + $0x1c4] ss:$16 sps:$4 sm:$0xff]   ;;  %v5563_v61 = vld [vmem:[#allocation5 + $0x1c0] ss:$16 sps:$4 sm:$0xff]   ;;  %v5564_v62 = vld [vmem:[#allocation5 + $0x1c8] ss:$16 sps:$4 sm:$0xff]  }
  0x95   :  { %v5565_v63 = vld [vmem:[#allocation5 + $0x1e4] ss:$16 sps:$4 sm:$0xff]   ;;  %v5567_v0 = vld [vmem:[#allocation5 + $0x1ec] ss:$16 sps:$4 sm:$0xff]   ;;  %v5569_v1 = vld [vmem:[#allocation5 + $0x1e0] ss:$16 sps:$4 sm:$0xff]  }
  0x96   :  { %3317 = vmatpush1.bf16.msra.mxu0 %v5509_v22  ;;  %3661 = vmatpush1.bf16.msra.mxu1 %v5510_v23  ;;  %v5570_v2 = vld [vmem:[#allocation5 + $0x1e8] ss:$16 sps:$4 sm:$0xff]   ;;  %v5573_v3 = vld [vmem:[#allocation5 + $0x204] ss:$16 sps:$4 sm:$0xff]   ;;  %v5576_v4 = vld [vmem:[#allocation5 + $0x20c] ss:$16 sps:$4 sm:$0xff]  }
  0x97   :  { %3318 = vmatprep.subr.bf16.mxu0 %v5511_v24  ;;  %3662 = vmatprep.subr.bf16.mxu1 %v5513_v25  ;;  %v5571_v6 = vld [vmem:[#allocation5 + $0x200] ss:$16 sps:$4 sm:$0xff]   ;;  %v5574_v7 = vld [vmem:[#allocation5 + $0x208] ss:$16 sps:$4 sm:$0xff]   ;;  %v5579_v8 = vld [vmem:[#allocation5 + $0x224] ss:$16 sps:$4 sm:$0xff]  }
  0x98   :  { %v5582_v9 = vld [vmem:[#allocation5 + $0x22c] ss:$16 sps:$4 sm:$0xff]   ;;  %v5577_v10 = vld [vmem:[#allocation5 + $0x220] ss:$16 sps:$4 sm:$0xff]   ;;  %v5580_v11 = vld [vmem:[#allocation5 + $0x228] ss:$16 sps:$4 sm:$0xff]  }
  0x99   :  { %v5585_v12 = vld [vmem:[#allocation5 + $0x244] ss:$16 sps:$4 sm:$0xff]   ;;  %v5588_v13 = vld [vmem:[#allocation5 + $0x24c] ss:$16 sps:$4 sm:$0xff]   ;;  %v5583_v14 = vld [vmem:[#allocation5 + $0x240] ss:$16 sps:$4 sm:$0xff]  }
  0x9a   :  { %3319 = vmatpush1.bf16.msra.mxu0 %v5515_v26  ;;  %3663 = vmatpush1.bf16.msra.mxu1 %v5516_v27  ;;  %v5586_v15 = vld [vmem:[#allocation5 + $0x248] ss:$16 sps:$4 sm:$0xff]   ;;  %v5591_v16 = vld [vmem:[#allocation5 + $0x264] ss:$16 sps:$4 sm:$0xff]   ;;  %v5594_v17 = vld [vmem:[#allocation5 + $0x26c] ss:$16 sps:$4 sm:$0xff]  }
  0x9b   :  { %3320 = vmatprep.subr.bf16.mxu0 %v5517_v28  ;;  %3664 = vmatprep.subr.bf16.mxu1 %v5519_v29  ;;  %v5589_v18 = vld [vmem:[#allocation5 + $0x260] ss:$16 sps:$4 sm:$0xff]   ;;  %v5592_v19 = vld [vmem:[#allocation5 + $0x268] ss:$16 sps:$4 sm:$0xff]   ;;  %v5597_v20 = vld [vmem:[#allocation5 + $0x284] ss:$16 sps:$4 sm:$0xff]  }
  0x9c   :  { %v5600_v21 = vld [vmem:[#allocation5 + $0x28c] ss:$16 sps:$4 sm:$0xff]   ;;  %v5595_v22 = vld [vmem:[#allocation5 + $0x280] ss:$16 sps:$4 sm:$0xff]   ;;  %v5598_v23 = vld [vmem:[#allocation5 + $0x288] ss:$16 sps:$4 sm:$0xff]  }
  0x9d   :  { %v5603_v24 = vld [vmem:[#allocation5 + $0x2a4] ss:$16 sps:$4 sm:$0xff]   ;;  %v5606_v25 = vld [vmem:[#allocation5 + $0x2ac] ss:$16 sps:$4 sm:$0xff]   ;;  %v5601_v26 = vld [vmem:[#allocation5 + $0x2a0] ss:$16 sps:$4 sm:$0xff]  }
  0x9e   :  { %3321 = vmatpush1.bf16.msra.mxu0 %v5521_v30  ;;  %3665 = vmatpush1.bf16.msra.mxu1 %v5522_v31  ;;  %v5604_v27 = vld [vmem:[#allocation5 + $0x2a8] ss:$16 sps:$4 sm:$0xff]   ;;  %v5609_v28 = vld [vmem:[#allocation5 + $0x2c4] ss:$16 sps:$4 sm:$0xff]   ;;  %v5612_v29 = vld [vmem:[#allocation5 + $0x2cc] ss:$16 sps:$4 sm:$0xff]  }
  0x9f   :  { %3322 = vmatprep.subr.bf16.mxu0 %v5523_v32  ;;  %3666 = vmatprep.subr.bf16.mxu1 %v5525_v33  ;;  %v6722_v30 = vld [vmem:[#allocation2 + $0x8] sm:$0xff]  ;;  %v5607_v32 = vld [vmem:[#allocation5 + $0x2c0] ss:$16 sps:$4 sm:$0xff]   ;;  %v5633_v47 = vld [vmem:[#allocation5 + $0x344] ss:$16 sps:$4 sm:$0xff]  }
  0xa0   :  { %v6724_v31 = vld [vmem:[#allocation2 + $0x48] sm:$0xff] }
  0xa1   :  { %v5610_v33 = vld [vmem:[#allocation5 + $0x2c8] ss:$16 sps:$4 sm:$0xff]  }
  0xa2   :  { %3323 = vmatpush1.bf16.msra.mxu0 %v5527_v34  ;;  %3667 = vmatpush1.bf16.msra.mxu1 %v5528_v35  ;;  %v4768_v34 = vcombine.high %v6722_v30, %v6724_v31  ;;  %v5615_v35 = vld [vmem:[#allocation5 + $0x2e4] ss:$16 sps:$4 sm:$0xff]   ;;  %v5628_v46 = vld [vmem:[#allocation5 + $0x328] ss:$16 sps:$4 sm:$0xff]  }
  0xa3   :  { %3324 = vmatprep.subr.bf16.mxu0 %v5529_v36  ;;  %3668 = vmatprep.subr.bf16.mxu1 %v5531_v37  ;;  %v5618_v36 = vld [vmem:[#allocation5 + $0x2ec] ss:$16 sps:$4 sm:$0xff]   ;;  %v5613_v37 = vld [vmem:[#allocation5 + $0x2e0] ss:$16 sps:$4 sm:$0xff]   ;;  %v5634_v50 = vld [vmem:[#allocation5 + $0x348] ss:$16 sps:$4 sm:$0xff]  }
  0xa6   :  { %3325 = vmatpush1.bf16.msra.mxu0 %v5533_v38  ;;  %3669 = vmatpush1.bf16.msra.mxu1 %v5534_v39  ;;  %v5616_v38 = vld [vmem:[#allocation5 + $0x2e8] ss:$16 sps:$4 sm:$0xff]   ;;  %v5621_v39 = vld [vmem:[#allocation5 + $0x304] ss:$16 sps:$4 sm:$0xff]  }
  0xa7   :  { %3326 = vmatprep.subr.bf16.mxu0 %v5535_v40  ;;  %3670 = vmatprep.subr.bf16.mxu1 %v5537_v41  ;;  %v5624_v40 = vld [vmem:[#allocation5 + $0x30c] ss:$16 sps:$4 sm:$0xff]   ;;  %v5619_v41 = vld [vmem:[#allocation5 + $0x300] ss:$16 sps:$4 sm:$0xff]  }
  0xaa   :  { %3327 = vmatpush1.bf16.msra.mxu0 %v5539_v42  ;;  %3671 = vmatpush1.bf16.msra.mxu1 %v5540_v43  ;;  %v5622_v42 = vld [vmem:[#allocation5 + $0x308] ss:$16 sps:$4 sm:$0xff]   ;;  %v5627_v43 = vld [vmem:[#allocation5 + $0x324] ss:$16 sps:$4 sm:$0xff]  }
  0xab   :  { %3328 = vmatprep.subr.bf16.mxu0 %v5541_v44  ;;  %3672 = vmatprep.subr.bf16.mxu1 %v5543_v45  ;;  %v5630_v44 = vld [vmem:[#allocation5 + $0x32c] ss:$16 sps:$4 sm:$0xff]   ;;  %v5625_v45 = vld [vmem:[#allocation5 + $0x320] ss:$16 sps:$4 sm:$0xff]  }
  0xae   :  { %3329 = vmatpush1.bf16.msra.mxu0 %v5545_v48  ;;  %3673 = vmatpush1.bf16.msra.mxu1 %v5546_v49  ;;  %v5636_v48 = vld [vmem:[#allocation5 + $0x34c] ss:$16 sps:$4 sm:$0xff]   ;;  %v5631_v49 = vld [vmem:[#allocation5 + $0x340] ss:$16 sps:$4 sm:$0xff]  }
  0xaf   :  { %3330 = vmatprep.subr.bf16.mxu0 %v5547_v51  ;;  %3674 = vmatprep.subr.bf16.mxu1 %v5549_v52  ;;  %v5639_v51 = vld [vmem:[#allocation5 + $0x364] ss:$16 sps:$4 sm:$0xff]   ;;  %v5642_v52 = vld [vmem:[#allocation5 + $0x36c] ss:$16 sps:$4 sm:$0xff]  }
  0xb2   :  { %3331 = vmatpush1.bf16.msra.mxu0 %v5551_v53  ;;  %3675 = vmatpush1.bf16.msra.mxu1 %v5552_v54  ;;  %v5637_v53 = vld [vmem:[#allocation5 + $0x360] ss:$16 sps:$4 sm:$0xff]   ;;  %v5640_v54 = vld [vmem:[#allocation5 + $0x368] ss:$16 sps:$4 sm:$0xff]  }
  0xb3   :  { %3332 = vmatprep.subr.bf16.mxu0 %v5553_v55  ;;  %3676 = vmatprep.subr.bf16.mxu1 %v5555_v56  ;;  %v5645_v55 = vld [vmem:[#allocation5 + $0x384] ss:$16 sps:$4 sm:$0xff]   ;;  %v5648_v56 = vld [vmem:[#allocation5 + $0x38c] ss:$16 sps:$4 sm:$0xff]  }
  0xb6   :  { %3333 = vmatpush1.bf16.msra.mxu0 %v5557_v57  ;;  %3677 = vmatpush1.bf16.msra.mxu1 %v5558_v58  ;;  %v5643_v57 = vld [vmem:[#allocation5 + $0x380] ss:$16 sps:$4 sm:$0xff]   ;;  %v5646_v58 = vld [vmem:[#allocation5 + $0x388] ss:$16 sps:$4 sm:$0xff]  }
  0xb7   :  { %3334 = vmatprep.subr.bf16.mxu0 %v5559_v59  ;;  %3678 = vmatprep.subr.bf16.mxu1 %v5561_v60  ;;  %v5651_v59 = vld [vmem:[#allocation5 + $0x3a4] ss:$16 sps:$4 sm:$0xff]   ;;  %v5654_v60 = vld [vmem:[#allocation5 + $0x3ac] ss:$16 sps:$4 sm:$0xff]  }
  0xba   :  { %3335 = vmatpush1.bf16.msra.mxu0 %v5563_v61  ;;  %3679 = vmatpush1.bf16.msra.mxu1 %v5564_v62  ;;  %v5649_v61 = vld [vmem:[#allocation5 + $0x3a0] ss:$16 sps:$4 sm:$0xff]   ;;  %v5652_v62 = vld [vmem:[#allocation5 + $0x3a8] ss:$16 sps:$4 sm:$0xff]  }
  0xbb   :  { %3336 = vmatprep.subr.bf16.mxu0 %v5565_v63  ;;  %3680 = vmatprep.subr.bf16.mxu1 %v5567_v0  ;;  %v5657_v63 = vld [vmem:[#allocation5 + $0x3c4] ss:$16 sps:$4 sm:$0xff]   ;;  %v5660_v0 = vld [vmem:[#allocation5 + $0x3cc] ss:$16 sps:$4 sm:$0xff]  }
  0xbe   :  { %3337 = vmatpush1.bf16.msra.mxu0 %v5569_v1  ;;  %3681 = vmatpush1.bf16.msra.mxu1 %v5570_v2  ;;  %v5655_v1 = vld [vmem:[#allocation5 + $0x3c0] ss:$16 sps:$4 sm:$0xff]   ;;  %v5658_v2 = vld [vmem:[#allocation5 + $0x3c8] ss:$16 sps:$4 sm:$0xff]  }
  0xbf   :  { %3349 = vmatprep.subr.bf16.mxu0 %v5573_v3  ;;  %3693 = vmatprep.subr.bf16.mxu1 %v5576_v4  ;;  %v5663_v3 = vld [vmem:[#allocation5 + $0x3e4] ss:$16 sps:$4 sm:$0xff]   ;;  %v5666_v4 = vld [vmem:[#allocation5 + $0x3ec] ss:$16 sps:$4 sm:$0xff]  }
  0xc1   :  { %3339 = vmatmul.mubr.bf16.vlgmr.msra.gmra.mrb[0].mxu0 %v4765_v5  ;;  %3683 = vmatmul.mubr.bf16.vlgmr.msra.gmra.mrb[0].mxu1 %v4765_v5  ;;  %v5661_v5 = vld [vmem:[#allocation5 + $0x3e0] ss:$16 sps:$4 sm:$0xff]  }
  0xc2   :  { %3350 = vmatpush1.bf16.msra.mxu0 %v5571_v6  ;;  %3694 = vmatpush1.bf16.msra.mxu1 %v5574_v7  ;;  %v5664_v6 = vld [vmem:[#allocation5 + $0x3e8] ss:$16 sps:$4 sm:$0xff]   ;;  %v5669_v7 = vld [vmem:[#allocation5 + $0x404] ss:$16 sps:$4 sm:$0xff]  }
  0xc3   :  { %3351 = vmatprep.subr.bf16.mxu0 %v5579_v8  ;;  %3695 = vmatprep.subr.bf16.mxu1 %v5582_v9  ;;  %v5672_v8 = vld [vmem:[#allocation5 + $0x40c] ss:$16 sps:$4 sm:$0xff]   ;;  %v4767_v9 = vcombine.low %v6722_v30, %v6724_v31  ;;  %v5694_v30 = vld [vmem:[#allocation5 + $0x488] ss:$16 sps:$4 sm:$0xff]   ;;  %v5699_v31 = vld [vmem:[#allocation5 + $0x4a4] ss:$16 sps:$4 sm:$0xff]  }
  0xc4   :  { %3381 = vmatprep.mubr.bf16.mxu0 %v4768_v34  ;;  %3725 = vmatprep.mubr.bf16.mxu1 %v4768_v34  ;;  %v5700_v34 = vld [vmem:[#allocation5 + $0x4a8] ss:$16 sps:$4 sm:$0xff]  }
  0xc6   :  { %3352 = vmatpush1.bf16.msra.mxu0 %v5577_v10  ;;  %3696 = vmatpush1.bf16.msra.mxu1 %v5580_v11  ;;  %v5667_v10 = vld [vmem:[#allocation5 + $0x400] ss:$16 sps:$4 sm:$0xff]   ;;  %v5670_v11 = vld [vmem:[#allocation5 + $0x408] ss:$16 sps:$4 sm:$0xff]  }
  0xc7   :  { %3353 = vmatprep.subr.bf16.mxu0 %v5585_v12  ;;  %3697 = vmatprep.subr.bf16.mxu1 %v5588_v13  ;;  %v5675_v12 = vld [vmem:[#allocation5 + $0x424] ss:$16 sps:$4 sm:$0xff]   ;;  %v5678_v13 = vld [vmem:[#allocation5 + $0x42c] ss:$16 sps:$4 sm:$0xff]  }
  0xca   :  { %3354 = vmatpush1.bf16.msra.mxu0 %v5583_v14  ;;  %3698 = vmatpush1.bf16.msra.mxu1 %v5586_v15  ;;  %v6730_v14 = vld [vmem:[#allocation2 + $0x10] sm:$0xff] }
  0xcb   :  { %3355 = vmatprep.subr.bf16.mxu0 %v5591_v16  ;;  %3699 = vmatprep.subr.bf16.mxu1 %v5594_v17  ;;  %v6732_v15 = vld [vmem:[#allocation2 + $0x50] sm:$0xff] }
  0xcc   :  { %v4770_v16 = vcombine.high %v6730_v14, %v6732_v15  ;;  %v5673_v17 = vld [vmem:[#allocation5 + $0x420] ss:$16 sps:$4 sm:$0xff]  }
  0xce   :  { %3356 = vmatpush1.bf16.msra.mxu0 %v5589_v18  ;;  %3700 = vmatpush1.bf16.msra.mxu1 %v5592_v19  ;;  %v5676_v18 = vld [vmem:[#allocation5 + $0x428] ss:$16 sps:$4 sm:$0xff]   ;;  %v5681_v19 = vld [vmem:[#allocation5 + $0x444] ss:$16 sps:$4 sm:$0xff]  }
  0xcf   :  { %3357 = vmatprep.subr.bf16.mxu0 %v5597_v20  ;;  %3701 = vmatprep.subr.bf16.mxu1 %v5600_v21  ;;  %v5684_v20 = vld [vmem:[#allocation5 + $0x44c] ss:$16 sps:$4 sm:$0xff]   ;;  %v5679_v21 = vld [vmem:[#allocation5 + $0x440] ss:$16 sps:$4 sm:$0xff]  }
  0xd2   :  { %3358 = vmatpush1.bf16.msra.mxu0 %v5595_v22  ;;  %3702 = vmatpush1.bf16.msra.mxu1 %v5598_v23  ;;  %v5682_v22 = vld [vmem:[#allocation5 + $0x448] ss:$16 sps:$4 sm:$0xff]   ;;  %v5687_v23 = vld [vmem:[#allocation5 + $0x464] ss:$16 sps:$4 sm:$0xff]  }
  0xd3   :  { %3359 = vmatprep.subr.bf16.mxu0 %v5603_v24  ;;  %3703 = vmatprep.subr.bf16.mxu1 %v5606_v25  ;;  %v5690_v24 = vld [vmem:[#allocation5 + $0x46c] ss:$16 sps:$4 sm:$0xff]   ;;  %v5685_v25 = vld [vmem:[#allocation5 + $0x460] ss:$16 sps:$4 sm:$0xff]  }
  0xd6   :  { %3360 = vmatpush1.bf16.msra.mxu0 %v5601_v26  ;;  %3704 = vmatpush1.bf16.msra.mxu1 %v5604_v27  ;;  %v5688_v26 = vld [vmem:[#allocation5 + $0x468] ss:$16 sps:$4 sm:$0xff]   ;;  %v5693_v27 = vld [vmem:[#allocation5 + $0x484] ss:$16 sps:$4 sm:$0xff]  }
  0xd7   :  { %3361 = vmatprep.subr.bf16.mxu0 %v5609_v28  ;;  %3705 = vmatprep.subr.bf16.mxu1 %v5612_v29  ;;  %v5696_v28 = vld [vmem:[#allocation5 + $0x48c] ss:$16 sps:$4 sm:$0xff]   ;;  %v5691_v29 = vld [vmem:[#allocation5 + $0x480] ss:$16 sps:$4 sm:$0xff]  }
  0xda   :  { %3362 = vmatpush1.bf16.msra.mxu0 %v5607_v32  ;;  %3706 = vmatpush1.bf16.msra.mxu1 %v5610_v33  ;;  %v5702_v32 = vld [vmem:[#allocation5 + $0x4ac] ss:$16 sps:$4 sm:$0xff]   ;;  %v5697_v33 = vld [vmem:[#allocation5 + $0x4a0] ss:$16 sps:$4 sm:$0xff]  }
  0xdb   :  { %3363 = vmatprep.subr.bf16.mxu0 %v5615_v35  ;;  %3707 = vmatprep.subr.bf16.mxu1 %v5618_v36  ;;  %v5705_v35 = vld [vmem:[#allocation5 + $0x4c4] ss:$16 sps:$4 sm:$0xff]   ;;  %v5708_v36 = vld [vmem:[#allocation5 + $0x4cc] ss:$16 sps:$4 sm:$0xff]  }
  0xde   :  { %3364 = vmatpush1.bf16.msra.mxu0 %v5613_v37  ;;  %3708 = vmatpush1.bf16.msra.mxu1 %v5616_v38  ;;  %v5703_v37 = vld [vmem:[#allocation5 + $0x4c0] ss:$16 sps:$4 sm:$0xff]   ;;  %v5706_v38 = vld [vmem:[#allocation5 + $0x4c8] ss:$16 sps:$4 sm:$0xff]  }
  0xdf   :  { %3365 = vmatprep.subr.bf16.mxu0 %v5621_v39  ;;  %3709 = vmatprep.subr.bf16.mxu1 %v5624_v40  ;;  %v5711_v39 = vld [vmem:[#allocation5 + $0x4e4] ss:$16 sps:$4 sm:$0xff]   ;;  %v5714_v40 = vld [vmem:[#allocation5 + $0x4ec] ss:$16 sps:$4 sm:$0xff]  }
  0xe2   :  { %3366 = vmatpush1.bf16.msra.mxu0 %v5619_v41  ;;  %3710 = vmatpush1.bf16.msra.mxu1 %v5622_v42  ;;  %v5709_v41 = vld [vmem:[#allocation5 + $0x4e0] ss:$16 sps:$4 sm:$0xff]   ;;  %v5712_v42 = vld [vmem:[#allocation5 + $0x4e8] ss:$16 sps:$4 sm:$0xff]  }
  0xe3   :  { %3367 = vmatprep.subr.bf16.mxu0 %v5627_v43  ;;  %3711 = vmatprep.subr.bf16.mxu1 %v5630_v44  ;;  %v5717_v43 = vld [vmem:[#allocation5 + $0x504] ss:$16 sps:$4 sm:$0xff]   ;;  %v5720_v44 = vld [vmem:[#allocation5 + $0x50c] ss:$16 sps:$4 sm:$0xff]  }
  0xe6   :  { %3368 = vmatpush1.bf16.msra.mxu0 %v5625_v45  ;;  %3712 = vmatpush1.bf16.msra.mxu1 %v5628_v46  ;;  %v5715_v45 = vld [vmem:[#allocation5 + $0x500] ss:$16 sps:$4 sm:$0xff]   ;;  %v5718_v46 = vld [vmem:[#allocation5 + $0x508] ss:$16 sps:$4 sm:$0xff]  }
  0xe7   :  { %3369 = vmatprep.subr.bf16.mxu0 %v5633_v47  ;;  %3713 = vmatprep.subr.bf16.mxu1 %v5636_v48  ;;  %v5723_v47 = vld [vmem:[#allocation5 + $0x524] ss:$16 sps:$4 sm:$0xff]   ;;  %v5726_v48 = vld [vmem:[#allocation5 + $0x52c] ss:$16 sps:$4 sm:$0xff]  }
  0xea   :  { %3370 = vmatpush1.bf16.msra.mxu0 %v5631_v49  ;;  %3714 = vmatpush1.bf16.msra.mxu1 %v5634_v50  ;;  %v5721_v49 = vld [vmem:[#allocation5 + $0x520] ss:$16 sps:$4 sm:$0xff]   ;;  %v5724_v50 = vld [vmem:[#allocation5 + $0x528] ss:$16 sps:$4 sm:$0xff]  }
  0xeb   :  { %3371 = vmatprep.subr.bf16.mxu0 %v5639_v51  ;;  %3715 = vmatprep.subr.bf16.mxu1 %v5642_v52  ;;  %v5729_v51 = vld [vmem:[#allocation5 + $0x544] ss:$16 sps:$4 sm:$0xff]   ;;  %v5732_v52 = vld [vmem:[#allocation5 + $0x54c] ss:$16 sps:$4 sm:$0xff]  }
  0xee   :  { %3372 = vmatpush1.bf16.msra.mxu0 %v5637_v53  ;;  %3716 = vmatpush1.bf16.msra.mxu1 %v5640_v54  ;;  %v5727_v53 = vld [vmem:[#allocation5 + $0x540] ss:$16 sps:$4 sm:$0xff]   ;;  %v5730_v54 = vld [vmem:[#allocation5 + $0x548] ss:$16 sps:$4 sm:$0xff]  }
  0xef   :  { %3373 = vmatprep.subr.bf16.mxu0 %v5645_v55  ;;  %3717 = vmatprep.subr.bf16.mxu1 %v5648_v56  ;;  %v5735_v55 = vld [vmem:[#allocation5 + $0x564] ss:$16 sps:$4 sm:$0xff]   ;;  %v5738_v56 = vld [vmem:[#allocation5 + $0x56c] ss:$16 sps:$4 sm:$0xff]  }
  0xf2   :  { %3374 = vmatpush1.bf16.msra.mxu0 %v5643_v57  ;;  %3718 = vmatpush1.bf16.msra.mxu1 %v5646_v58  ;;  %v5733_v57 = vld [vmem:[#allocation5 + $0x560] ss:$16 sps:$4 sm:$0xff]   ;;  %v5736_v58 = vld [vmem:[#allocation5 + $0x568] ss:$16 sps:$4 sm:$0xff]  }
  0xf3   :  { %3375 = vmatprep.subr.bf16.mxu0 %v5651_v59  ;;  %3719 = vmatprep.subr.bf16.mxu1 %v5654_v60  ;;  %v5741_v59 = vld [vmem:[#allocation5 + $0x584] ss:$16 sps:$4 sm:$0xff]   ;;  %v5744_v60 = vld [vmem:[#allocation5 + $0x58c] ss:$16 sps:$4 sm:$0xff]  }
  0xf6   :  { %3376 = vmatpush1.bf16.msra.mxu0 %v5649_v61  ;;  %3720 = vmatpush1.bf16.msra.mxu1 %v5652_v62  ;;  %v5739_v61 = vld [vmem:[#allocation5 + $0x580] ss:$16 sps:$4 sm:$0xff]   ;;  %v5742_v62 = vld [vmem:[#allocation5 + $0x588] ss:$16 sps:$4 sm:$0xff]  }
  0xf7   :  { %3377 = vmatprep.subr.bf16.mxu0 %v5657_v63  ;;  %3721 = vmatprep.subr.bf16.mxu1 %v5660_v0  ;;  %v5747_v63 = vld [vmem:[#allocation5 + $0x5a4] ss:$16 sps:$4 sm:$0xff]   ;;  %v5750_v0 = vld [vmem:[#allocation5 + $0x5ac] ss:$16 sps:$4 sm:$0xff]  }
  0xfa   :  { %3378 = vmatpush1.bf16.msra.mxu0 %v5655_v1  ;;  %3722 = vmatpush1.bf16.msra.mxu1 %v5658_v2  ;;  %v5745_v1 = vld [vmem:[#allocation5 + $0x5a0] ss:$16 sps:$4 sm:$0xff]   ;;  %v5748_v2 = vld [vmem:[#allocation5 + $0x5a8] ss:$16 sps:$4 sm:$0xff]  }
  0xfb   :  { %3379 = vmatprep.subr.bf16.mxu0 %v5663_v3  ;;  %3723 = vmatprep.subr.bf16.mxu1 %v5666_v4  ;;  %v5753_v3 = vld [vmem:[#allocation5 + $0x5c4] ss:$16 sps:$4 sm:$0xff]   ;;  %v5756_v4 = vld [vmem:[#allocation5 + $0x5cc] ss:$16 sps:$4 sm:$0xff]  }
  0xfe   :  { %3380 = vmatpush1.bf16.msra.mxu0 %v5661_v5  ;;  %3724 = vmatpush1.bf16.msra.mxu1 %v5664_v6  ;;  %v5751_v5 = vld [vmem:[#allocation5 + $0x5c0] ss:$16 sps:$4 sm:$0xff]   ;;  %v5754_v6 = vld [vmem:[#allocation5 + $0x5c8] ss:$16 sps:$4 sm:$0xff]  }
  0xff   :  { %3392 = vmatprep.subr.bf16.mxu0 %v5669_v7  ;;  %3736 = vmatprep.subr.bf16.mxu1 %v5672_v8  ;;  %v5759_v7 = vld [vmem:[#allocation5 + $0x5e4] ss:$16 sps:$4 sm:$0xff]   ;;  %v5762_v8 = vld [vmem:[#allocation5 + $0x5ec] ss:$16 sps:$4 sm:$0xff]  }
 0x101   :  { %3382 = vmatmul.mubr.bf16.vlgmr.msra.gmra.mrb[0].mxu0 %v4767_v9  ;;  %3726 = vmatmul.mubr.bf16.vlgmr.msra.gmra.mrb[0].mxu1 %v4767_v9  ;;  %v5757_v9 = vld [vmem:[#allocation5 + $0x5e0] ss:$16 sps:$4 sm:$0xff]  }
 0x102   :  { %3393 = vmatpush1.bf16.msra.mxu0 %v5667_v10  ;;  %3737 = vmatpush1.bf16.msra.mxu1 %v5670_v11  ;;  %v5760_v10 = vld [vmem:[#allocation5 + $0x5e8] ss:$16 sps:$4 sm:$0xff]   ;;  %v5765_v11 = vld [vmem:[#allocation5 + $0x604] ss:$16 sps:$4 sm:$0xff]  }
 0x103   :  { %3394 = vmatprep.subr.bf16.mxu0 %v5675_v12  ;;  %3738 = vmatprep.subr.bf16.mxu1 %v5678_v13  ;;  %v5768_v12 = vld [vmem:[#allocation5 + $0x60c] ss:$16 sps:$4 sm:$0xff]   ;;  %v5763_v13 = vld [vmem:[#allocation5 + $0x600] ss:$16 sps:$4 sm:$0xff]  }
 0x104   :  { %3424 = vmatprep.mubr.bf16.mxu0 %v4770_v16  ;;  %3768 = vmatprep.mubr.bf16.mxu1 %v4770_v16  ;;  %v5766_v16 = vld [vmem:[#allocation5 + $0x608] ss:$16 sps:$4 sm:$0xff]  }
 0x106   :  { %3395 = vmatpush1.bf16.msra.mxu0 %v5673_v17  ;;  %3739 = vmatpush1.bf16.msra.mxu1 %v5676_v18  ;;  %v4769_v17 = vcombine.low %v6730_v14, %v6732_v15  ;;  %v6738_v18 = vld [vmem:[#allocation2 + $0x18] sm:$0xff]  ;;  %v5777_v14 = vld [vmem:[#allocation5 + $0x644] ss:$16 sps:$4 sm:$0xff]  }
 0x107   :  { %3396 = vmatprep.subr.bf16.mxu0 %v5681_v19  ;;  %3740 = vmatprep.subr.bf16.mxu1 %v5684_v20  ;;  %v6740_v19 = vld [vmem:[#allocation2 + $0x58] sm:$0xff]  ;;  %v5771_v20 = vld [vmem:[#allocation5 + $0x624] ss:$16 sps:$4 sm:$0xff]  }
 0x108   :  { %v5780_v15 = vld [vmem:[#allocation5 + $0x64c] ss:$16 sps:$4 sm:$0xff]  }
 0x10a   :  { %3397 = vmatpush1.bf16.msra.mxu0 %v5679_v21  ;;  %3741 = vmatpush1.bf16.msra.mxu1 %v5682_v22  ;;  %v5774_v21 = vld [vmem:[#allocation5 + $0x62c] ss:$16 sps:$4 sm:$0xff]   ;;  %v4772_v22 = vcombine.high %v6738_v18, %v6740_v19 }
 0x10b   :  { %3398 = vmatprep.subr.bf16.mxu0 %v5687_v23  ;;  %3742 = vmatprep.subr.bf16.mxu1 %v5690_v24  ;;  %v5769_v23 = vld [vmem:[#allocation5 + $0x620] ss:$16 sps:$4 sm:$0xff]   ;;  %v5772_v24 = vld [vmem:[#allocation5 + $0x628] ss:$16 sps:$4 sm:$0xff]  }
 0x10e   :  { %3399 = vmatpush1.bf16.msra.mxu0 %v5685_v25  ;;  %3743 = vmatpush1.bf16.msra.mxu1 %v5688_v26  ;;  %v5775_v25 = vld [vmem:[#allocation5 + $0x640] ss:$16 sps:$4 sm:$0xff]   ;;  %v5778_v26 = vld [vmem:[#allocation5 + $0x648] ss:$16 sps:$4 sm:$0xff]  }
 0x10f   :  { %3400 = vmatprep.subr.bf16.mxu0 %v5693_v27  ;;  %3744 = vmatprep.subr.bf16.mxu1 %v5696_v28  ;;  %v5783_v27 = vld [vmem:[#allocation5 + $0x664] ss:$16 sps:$4 sm:$0xff]   ;;  %v5786_v28 = vld [vmem:[#allocation5 + $0x66c] ss:$16 sps:$4 sm:$0xff]  }
 0x112   :  { %3401 = vmatpush1.bf16.msra.mxu0 %v5691_v29  ;;  %3745 = vmatpush1.bf16.msra.mxu1 %v5694_v30  ;;  %v5781_v29 = vld [vmem:[#allocation5 + $0x660] ss:$16 sps:$4 sm:$0xff]   ;;  %v5784_v30 = vld [vmem:[#allocation5 + $0x668] ss:$16 sps:$4 sm:$0xff]  }
 0x113   :  { %3402 = vmatprep.subr.bf16.mxu0 %v5699_v31  ;;  %3746 = vmatprep.subr.bf16.mxu1 %v5702_v32  ;;  %v5789_v31 = vld [vmem:[#allocation5 + $0x684] ss:$16 sps:$4 sm:$0xff]   ;;  %v5792_v32 = vld [vmem:[#allocation5 + $0x68c] ss:$16 sps:$4 sm:$0xff]  }
 0x116   :  { %3403 = vmatpush1.bf16.msra.mxu0 %v5697_v33  ;;  %3747 = vmatpush1.bf16.msra.mxu1 %v5700_v34  ;;  %v5787_v33 = vld [vmem:[#allocation5 + $0x680] ss:$16 sps:$4 sm:$0xff]   ;;  %v5790_v34 = vld [vmem:[#allocation5 + $0x688] ss:$16 sps:$4 sm:$0xff]  }
 0x117   :  { %3404 = vmatprep.subr.bf16.mxu0 %v5705_v35  ;;  %3748 = vmatprep.subr.bf16.mxu1 %v5708_v36  ;;  %v5795_v35 = vld [vmem:[#allocation5 + $0x6a4] ss:$16 sps:$4 sm:$0xff]   ;;  %v5798_v36 = vld [vmem:[#allocation5 + $0x6ac] ss:$16 sps:$4 sm:$0xff]  }
 0x11a   :  { %3405 = vmatpush1.bf16.msra.mxu0 %v5703_v37  ;;  %3749 = vmatpush1.bf16.msra.mxu1 %v5706_v38  ;;  %v5793_v37 = vld [vmem:[#allocation5 + $0x6a0] ss:$16 sps:$4 sm:$0xff]   ;;  %v5796_v38 = vld [vmem:[#allocation5 + $0x6a8] ss:$16 sps:$4 sm:$0xff]  }
 0x11b   :  { %3406 = vmatprep.subr.bf16.mxu0 %v5711_v39  ;;  %3750 = vmatprep.subr.bf16.mxu1 %v5714_v40  ;;  %v5801_v39 = vld [vmem:[#allocation5 + $0x6c4] ss:$16 sps:$4 sm:$0xff]   ;;  %v5804_v40 = vld [vmem:[#allocation5 + $0x6cc] ss:$16 sps:$4 sm:$0xff]  }
 0x11e   :  { %3407 = vmatpush1.bf16.msra.mxu0 %v5709_v41  ;;  %3751 = vmatpush1.bf16.msra.mxu1 %v5712_v42  ;;  %v5799_v41 = vld [vmem:[#allocation5 + $0x6c0] ss:$16 sps:$4 sm:$0xff]   ;;  %v5802_v42 = vld [vmem:[#allocation5 + $0x6c8] ss:$16 sps:$4 sm:$0xff]  }
 0x11f   :  { %3408 = vmatprep.subr.bf16.mxu0 %v5717_v43  ;;  %3752 = vmatprep.subr.bf16.mxu1 %v5720_v44  ;;  %v5807_v43 = vld [vmem:[#allocation5 + $0x6e4] ss:$16 sps:$4 sm:$0xff]   ;;  %v5810_v44 = vld [vmem:[#allocation5 + $0x6ec] ss:$16 sps:$4 sm:$0xff]  }
 0x122   :  { %3409 = vmatpush1.bf16.msra.mxu0 %v5715_v45  ;;  %3753 = vmatpush1.bf16.msra.mxu1 %v5718_v46  ;;  %v5805_v45 = vld [vmem:[#allocation5 + $0x6e0] ss:$16 sps:$4 sm:$0xff]   ;;  %v5808_v46 = vld [vmem:[#allocation5 + $0x6e8] ss:$16 sps:$4 sm:$0xff]  }
 0x123   :  { %3410 = vmatprep.subr.bf16.mxu0 %v5723_v47  ;;  %3754 = vmatprep.subr.bf16.mxu1 %v5726_v48  ;;  %v5813_v47 = vld [vmem:[#allocation5 + $0x704] ss:$16 sps:$4 sm:$0xff]   ;;  %v5816_v48 = vld [vmem:[#allocation5 + $0x70c] ss:$16 sps:$4 sm:$0xff]  }
 0x126   :  { %3411 = vmatpush1.bf16.msra.mxu0 %v5721_v49  ;;  %3755 = vmatpush1.bf16.msra.mxu1 %v5724_v50  ;;  %v5811_v49 = vld [vmem:[#allocation5 + $0x700] ss:$16 sps:$4 sm:$0xff]   ;;  %v5814_v50 = vld [vmem:[#allocation5 + $0x708] ss:$16 sps:$4 sm:$0xff]  }
 0x127   :  { %3412 = vmatprep.subr.bf16.mxu0 %v5729_v51  ;;  %3756 = vmatprep.subr.bf16.mxu1 %v5732_v52  ;;  %v5819_v51 = vld [vmem:[#allocation5 + $0x724] ss:$16 sps:$4 sm:$0xff]   ;;  %v5822_v52 = vld [vmem:[#allocation5 + $0x72c] ss:$16 sps:$4 sm:$0xff]  }
 0x12a   :  { %3413 = vmatpush1.bf16.msra.mxu0 %v5727_v53  ;;  %3757 = vmatpush1.bf16.msra.mxu1 %v5730_v54  ;;  %v5817_v53 = vld [vmem:[#allocation5 + $0x720] ss:$16 sps:$4 sm:$0xff]   ;;  %v5820_v54 = vld [vmem:[#allocation5 + $0x728] ss:$16 sps:$4 sm:$0xff]  }
 0x12b   :  { %3414 = vmatprep.subr.bf16.mxu0 %v5735_v55  ;;  %3758 = vmatprep.subr.bf16.mxu1 %v5738_v56  ;;  %v5825_v55 = vld [vmem:[#allocation5 + $0x744] ss:$16 sps:$4 sm:$0xff]   ;;  %v5828_v56 = vld [vmem:[#allocation5 + $0x74c] ss:$16 sps:$4 sm:$0xff]  }
 0x12e   :  { %3415 = vmatpush1.bf16.msra.mxu0 %v5733_v57  ;;  %3759 = vmatpush1.bf16.msra.mxu1 %v5736_v58  ;;  %v5823_v57 = vld [vmem:[#allocation5 + $0x740] ss:$16 sps:$4 sm:$0xff]   ;;  %v5826_v58 = vld [vmem:[#allocation5 + $0x748] ss:$16 sps:$4 sm:$0xff]  }
 0x12f   :  { %3416 = vmatprep.subr.bf16.mxu0 %v5741_v59  ;;  %3760 = vmatprep.subr.bf16.mxu1 %v5744_v60  ;;  %v5831_v59 = vld [vmem:[#allocation5 + $0x764] ss:$16 sps:$4 sm:$0xff]   ;;  %v5834_v60 = vld [vmem:[#allocation5 + $0x76c] ss:$16 sps:$4 sm:$0xff]  }
 0x132   :  { %3417 = vmatpush1.bf16.msra.mxu0 %v5739_v61  ;;  %3761 = vmatpush1.bf16.msra.mxu1 %v5742_v62  ;;  %v5829_v61 = vld [vmem:[#allocation5 + $0x760] ss:$16 sps:$4 sm:$0xff]   ;;  %v5832_v62 = vld [vmem:[#allocation5 + $0x768] ss:$16 sps:$4 sm:$0xff]  }
 0x133   :  { %3418 = vmatprep.subr.bf16.mxu0 %v5747_v63  ;;  %3762 = vmatprep.subr.bf16.mxu1 %v5750_v0  ;;  %v5837_v63 = vld [vmem:[#allocation5 + $0x784] ss:$16 sps:$4 sm:$0xff]   ;;  %v5840_v0 = vld [vmem:[#allocation5 + $0x78c] ss:$16 sps:$4 sm:$0xff]  }
 0x136   :  { %3419 = vmatpush1.bf16.msra.mxu0 %v5745_v1  ;;  %3763 = vmatpush1.bf16.msra.mxu1 %v5748_v2  ;;  %v5835_v1 = vld [vmem:[#allocation5 + $0x780] ss:$16 sps:$4 sm:$0xff]   ;;  %v5838_v2 = vld [vmem:[#allocation5 + $0x788] ss:$16 sps:$4 sm:$0xff]  }
 0x137   :  { %3420 = vmatprep.subr.bf16.mxu0 %v5753_v3  ;;  %3764 = vmatprep.subr.bf16.mxu1 %v5756_v4  ;;  %v5843_v3 = vld [vmem:[#allocation5 + $0x7a4] ss:$16 sps:$4 sm:$0xff]   ;;  %v5846_v4 = vld [vmem:[#allocation5 + $0x7ac] ss:$16 sps:$4 sm:$0xff]  }
 0x13a   :  { %3421 = vmatpush1.bf16.msra.mxu0 %v5751_v5  ;;  %3765 = vmatpush1.bf16.msra.mxu1 %v5754_v6  ;;  %v5841_v5 = vld [vmem:[#allocation5 + $0x7a0] ss:$16 sps:$4 sm:$0xff]   ;;  %v5844_v6 = vld [vmem:[#allocation5 + $0x7a8] ss:$16 sps:$4 sm:$0xff]  }
 0x13b   :  { %3422 = vmatprep.subr.bf16.mxu0 %v5759_v7  ;;  %3766 = vmatprep.subr.bf16.mxu1 %v5762_v8  ;;  %v5849_v7 = vld [vmem:[#allocation5 + $0x7c4] ss:$16 sps:$4 sm:$0xff]   ;;  %v5852_v8 = vld [vmem:[#allocation5 + $0x7cc] ss:$16 sps:$4 sm:$0xff]  }
 0x13e   :  { %3423 = vmatpush1.bf16.msra.mxu0 %v5757_v9  ;;  %3767 = vmatpush1.bf16.msra.mxu1 %v5760_v10  ;;  %v5847_v9 = vld [vmem:[#allocation5 + $0x7c0] ss:$16 sps:$4 sm:$0xff]   ;;  %v5850_v10 = vld [vmem:[#allocation5 + $0x7c8] ss:$16 sps:$4 sm:$0xff]  }
 0x13f   :  { %3435 = vmatprep.subr.bf16.mxu0 %v5765_v11  ;;  %3779 = vmatprep.subr.bf16.mxu1 %v5768_v12  ;;  %v5855_v11 = vld [vmem:[#allocation5 + $0x7e4] ss:$16 sps:$4 sm:$0xff]   ;;  %v5858_v12 = vld [vmem:[#allocation5 + $0x7ec] ss:$16 sps:$4 sm:$0xff]  }
 0x141   :  { %3425 = vmatmul.mubr.bf16.vlgmr.msra.gmra.mrb[0].mxu0 %v4769_v17  ;;  %3769 = vmatmul.mubr.bf16.vlgmr.msra.gmra.mrb[0].mxu1 %v4769_v17  ;;  %v5861_v17 = vld [vmem:[#allocation5 + $0x804] ss:$16 sps:$4 sm:$0xff]  }
 0x142   :  { %3436 = vmatpush1.bf16.msra.mxu0 %v5763_v13  ;;  %3780 = vmatpush1.bf16.msra.mxu1 %v5766_v16  ;;  %v5853_v13 = vld [vmem:[#allocation5 + $0x7e0] ss:$16 sps:$4 sm:$0xff]   ;;  %v5856_v16 = vld [vmem:[#allocation5 + $0x7e8] ss:$16 sps:$4 sm:$0xff]  }
 0x143   :  { %3437 = vmatprep.subr.bf16.mxu0 %v5771_v20  ;;  %3781 = vmatprep.subr.bf16.mxu1 %v5774_v21  ;;  %v5864_v20 = vld [vmem:[#allocation5 + $0x80c] ss:$16 sps:$4 sm:$0xff]   ;;  %v6744_v21 = vld [vmem:[#allocation2 + $0x20] sm:$0xff] }
 0x144   :  { %3467 = vmatprep.mubr.bf16.mxu0 %v4772_v22  ;;  %3811 = vmatprep.mubr.bf16.mxu1 %v4772_v22  ;;  %v4771_v22 = vcombine.low %v6738_v18, %v6740_v19  ;;  %v5873_v18 = vld [vmem:[#allocation5 + $0x844] ss:$16 sps:$4 sm:$0xff]   ;;  %v5876_v19 = vld [vmem:[#allocation5 + $0x84c] ss:$16 sps:$4 sm:$0xff]  }
 0x146   :  { %3438 = vmatpush1.bf16.msra.mxu0 %v5769_v23  ;;  %3782 = vmatpush1.bf16.msra.mxu1 %v5772_v24  ;;  %v6748_v23 = vld [vmem:[#allocation2 + $0x60] sm:$0xff] }
 0x147   :  { %3439 = vmatprep.subr.bf16.mxu0 %v5777_v14  ;;  %3783 = vmatprep.subr.bf16.mxu1 %v5780_v15  ;;  %v5859_v24 = vld [vmem:[#allocation5 + $0x800] ss:$16 sps:$4 sm:$0xff]   ;;  %v5862_v14 = vld [vmem:[#allocation5 + $0x808] ss:$16 sps:$4 sm:$0xff]   ;;  %v5867_v15 = vld [vmem:[#allocation5 + $0x824] ss:$16 sps:$4 sm:$0xff]  }
 0x14a   :  { %3440 = vmatpush1.bf16.msra.mxu0 %v5775_v25  ;;  %3784 = vmatpush1.bf16.msra.mxu1 %v5778_v26  ;;  %v5870_v25 = vld [vmem:[#allocation5 + $0x82c] ss:$16 sps:$4 sm:$0xff]   ;;  %v4774_v26 = vcombine.high %v6744_v21, %v6748_v23 }
 0x14b   :  { %3441 = vmatprep.subr.bf16.mxu0 %v5783_v27  ;;  %3785 = vmatprep.subr.bf16.mxu1 %v5786_v28  ;;  %v5865_v27 = vld [vmem:[#allocation5 + $0x820] ss:$16 sps:$4 sm:$0xff]   ;;  %v5868_v28 = vld [vmem:[#allocation5 + $0x828] ss:$16 sps:$4 sm:$0xff]  }
 0x14e   :  { %3442 = vmatpush1.bf16.msra.mxu0 %v5781_v29  ;;  %3786 = vmatpush1.bf16.msra.mxu1 %v5784_v30  ;;  %v5871_v29 = vld [vmem:[#allocation5 + $0x840] ss:$16 sps:$4 sm:$0xff]   ;;  %v5874_v30 = vld [vmem:[#allocation5 + $0x848] ss:$16 sps:$4 sm:$0xff]  }
 0x14f   :  { %3443 = vmatprep.subr.bf16.mxu0 %v5789_v31  ;;  %3787 = vmatprep.subr.bf16.mxu1 %v5792_v32  ;;  %v5879_v31 = vld [vmem:[#allocation5 + $0x864] ss:$16 sps:$4 sm:$0xff]   ;;  %v5882_v32 = vld [vmem:[#allocation5 + $0x86c] ss:$16 sps:$4 sm:$0xff]  }
 0x152   :  { %3444 = vmatpush1.bf16.msra.mxu0 %v5787_v33  ;;  %3788 = vmatpush1.bf16.msra.mxu1 %v5790_v34  ;;  %v5877_v33 = vld [vmem:[#allocation5 + $0x860] ss:$16 sps:$4 sm:$0xff]   ;;  %v5880_v34 = vld [vmem:[#allocation5 + $0x868] ss:$16 sps:$4 sm:$0xff]  }
 0x153   :  { %3445 = vmatprep.subr.bf16.mxu0 %v5795_v35  ;;  %3789 = vmatprep.subr.bf16.mxu1 %v5798_v36  ;;  %v5885_v35 = vld [vmem:[#allocation5 + $0x884] ss:$16 sps:$4 sm:$0xff]   ;;  %v5888_v36 = vld [vmem:[#allocation5 + $0x88c] ss:$16 sps:$4 sm:$0xff]  }
 0x156   :  { %3446 = vmatpush1.bf16.msra.mxu0 %v5793_v37  ;;  %3790 = vmatpush1.bf16.msra.mxu1 %v5796_v38  ;;  %v5883_v37 = vld [vmem:[#allocation5 + $0x880] ss:$16 sps:$4 sm:$0xff]   ;;  %v5886_v38 = vld [vmem:[#allocation5 + $0x888] ss:$16 sps:$4 sm:$0xff]  }
 0x157   :  { %3447 = vmatprep.subr.bf16.mxu0 %v5801_v39  ;;  %3791 = vmatprep.subr.bf16.mxu1 %v5804_v40  ;;  %v5891_v39 = vld [vmem:[#allocation5 + $0x8a4] ss:$16 sps:$4 sm:$0xff]   ;;  %v5894_v40 = vld [vmem:[#allocation5 + $0x8ac] ss:$16 sps:$4 sm:$0xff]  }
 0x15a   :  { %3448 = vmatpush1.bf16.msra.mxu0 %v5799_v41  ;;  %3792 = vmatpush1.bf16.msra.mxu1 %v5802_v42  ;;  %v5889_v41 = vld [vmem:[#allocation5 + $0x8a0] ss:$16 sps:$4 sm:$0xff]   ;;  %v5892_v42 = vld [vmem:[#allocation5 + $0x8a8] ss:$16 sps:$4 sm:$0xff]  }
 0x15b   :  { %3449 = vmatprep.subr.bf16.mxu0 %v5807_v43  ;;  %3793 = vmatprep.subr.bf16.mxu1 %v5810_v44  ;;  %v5897_v43 = vld [vmem:[#allocation5 + $0x8c4] ss:$16 sps:$4 sm:$0xff]   ;;  %v5900_v44 = vld [vmem:[#allocation5 + $0x8cc] ss:$16 sps:$4 sm:$0xff]  }
 0x15e   :  { %3450 = vmatpush1.bf16.msra.mxu0 %v5805_v45  ;;  %3794 = vmatpush1.bf16.msra.mxu1 %v5808_v46  ;;  %v5895_v45 = vld [vmem:[#allocation5 + $0x8c0] ss:$16 sps:$4 sm:$0xff]   ;;  %v5898_v46 = vld [vmem:[#allocation5 + $0x8c8] ss:$16 sps:$4 sm:$0xff]  }
 0x15f   :  { %3451 = vmatprep.subr.bf16.mxu0 %v5813_v47  ;;  %3795 = vmatprep.subr.bf16.mxu1 %v5816_v48  ;;  %v5903_v47 = vld [vmem:[#allocation5 + $0x8e4] ss:$16 sps:$4 sm:$0xff]   ;;  %v5906_v48 = vld [vmem:[#allocation5 + $0x8ec] ss:$16 sps:$4 sm:$0xff]  }
 0x162   :  { %3452 = vmatpush1.bf16.msra.mxu0 %v5811_v49  ;;  %3796 = vmatpush1.bf16.msra.mxu1 %v5814_v50  ;;  %v5901_v49 = vld [vmem:[#allocation5 + $0x8e0] ss:$16 sps:$4 sm:$0xff]   ;;  %v5904_v50 = vld [vmem:[#allocation5 + $0x8e8] ss:$16 sps:$4 sm:$0xff]  }
 0x163   :  { %3453 = vmatprep.subr.bf16.mxu0 %v5819_v51  ;;  %3797 = vmatprep.subr.bf16.mxu1 %v5822_v52  ;;  %v5909_v51 = vld [vmem:[#allocation5 + $0x904] ss:$16 sps:$4 sm:$0xff]   ;;  %v5912_v52 = vld [vmem:[#allocation5 + $0x90c] ss:$16 sps:$4 sm:$0xff]  }
 0x166   :  { %3454 = vmatpush1.bf16.msra.mxu0 %v5817_v53  ;;  %3798 = vmatpush1.bf16.msra.mxu1 %v5820_v54  ;;  %v5907_v53 = vld [vmem:[#allocation5 + $0x900] ss:$16 sps:$4 sm:$0xff]   ;;  %v5910_v54 = vld [vmem:[#allocation5 + $0x908] ss:$16 sps:$4 sm:$0xff]  }
 0x167   :  { %3455 = vmatprep.subr.bf16.mxu0 %v5825_v55  ;;  %3799 = vmatprep.subr.bf16.mxu1 %v5828_v56  ;;  %v5915_v55 = vld [vmem:[#allocation5 + $0x924] ss:$16 sps:$4 sm:$0xff]   ;;  %v5918_v56 = vld [vmem:[#allocation5 + $0x92c] ss:$16 sps:$4 sm:$0xff]  }
 0x16a   :  { %3456 = vmatpush1.bf16.msra.mxu0 %v5823_v57  ;;  %3800 = vmatpush1.bf16.msra.mxu1 %v5826_v58  ;;  %v5913_v57 = vld [vmem:[#allocation5 + $0x920] ss:$16 sps:$4 sm:$0xff]   ;;  %v5916_v58 = vld [vmem:[#allocation5 + $0x928] ss:$16 sps:$4 sm:$0xff]  }
 0x16b   :  { %3457 = vmatprep.subr.bf16.mxu0 %v5831_v59  ;;  %3801 = vmatprep.subr.bf16.mxu1 %v5834_v60  ;;  %v5921_v59 = vld [vmem:[#allocation5 + $0x944] ss:$16 sps:$4 sm:$0xff]   ;;  %v5924_v60 = vld [vmem:[#allocation5 + $0x94c] ss:$16 sps:$4 sm:$0xff]  }
 0x16e   :  { %3458 = vmatpush1.bf16.msra.mxu0 %v5829_v61  ;;  %3802 = vmatpush1.bf16.msra.mxu1 %v5832_v62  ;;  %v5919_v61 = vld [vmem:[#allocation5 + $0x940] ss:$16 sps:$4 sm:$0xff]   ;;  %v5922_v62 = vld [vmem:[#allocation5 + $0x948] ss:$16 sps:$4 sm:$0xff]  }
 0x16f   :  { %3459 = vmatprep.subr.bf16.mxu0 %v5837_v63  ;;  %3803 = vmatprep.subr.bf16.mxu1 %v5840_v0  ;;  %v5927_v63 = vld [vmem:[#allocation5 + $0x964] ss:$16 sps:$4 sm:$0xff]   ;;  %v5930_v0 = vld [vmem:[#allocation5 + $0x96c] ss:$16 sps:$4 sm:$0xff]  }
 0x172   :  { %3460 = vmatpush1.bf16.msra.mxu0 %v5835_v1  ;;  %3804 = vmatpush1.bf16.msra.mxu1 %v5838_v2  ;;  %v5925_v1 = vld [vmem:[#allocation5 + $0x960] ss:$16 sps:$4 sm:$0xff]   ;;  %v5928_v2 = vld [vmem:[#allocation5 + $0x968] ss:$16 sps:$4 sm:$0xff]  }
 0x173   :  { %3461 = vmatprep.subr.bf16.mxu0 %v5843_v3  ;;  %3805 = vmatprep.subr.bf16.mxu1 %v5846_v4  ;;  %v5933_v3 = vld [vmem:[#allocation5 + $0x984] ss:$16 sps:$4 sm:$0xff]   ;;  %v5936_v4 = vld [vmem:[#allocation5 + $0x98c] ss:$16 sps:$4 sm:$0xff]  }
 0x176   :  { %3462 = vmatpush1.bf16.msra.mxu0 %v5841_v5  ;;  %3806 = vmatpush1.bf16.msra.mxu1 %v5844_v6  ;;  %v5931_v5 = vld [vmem:[#allocation5 + $0x980] ss:$16 sps:$4 sm:$0xff]   ;;  %v5934_v6 = vld [vmem:[#allocation5 + $0x988] ss:$16 sps:$4 sm:$0xff]  }
 0x177   :  { %3463 = vmatprep.subr.bf16.mxu0 %v5849_v7  ;;  %3807 = vmatprep.subr.bf16.mxu1 %v5852_v8  ;;  %v5939_v7 = vld [vmem:[#allocation5 + $0x9a4] ss:$16 sps:$4 sm:$0xff]   ;;  %v5942_v8 = vld [vmem:[#allocation5 + $0x9ac] ss:$16 sps:$4 sm:$0xff]  }
 0x17a   :  { %3464 = vmatpush1.bf16.msra.mxu0 %v5847_v9  ;;  %3808 = vmatpush1.bf16.msra.mxu1 %v5850_v10  ;;  %v5937_v9 = vld [vmem:[#allocation5 + $0x9a0] ss:$16 sps:$4 sm:$0xff]   ;;  %v5940_v10 = vld [vmem:[#allocation5 + $0x9a8] ss:$16 sps:$4 sm:$0xff]  }
 0x17b   :  { %3465 = vmatprep.subr.bf16.mxu0 %v5855_v11  ;;  %3809 = vmatprep.subr.bf16.mxu1 %v5858_v12  ;;  %v5945_v11 = vld [vmem:[#allocation5 + $0x9c4] ss:$16 sps:$4 sm:$0xff]   ;;  %v5948_v12 = vld [vmem:[#allocation5 + $0x9cc] ss:$16 sps:$4 sm:$0xff]  }
 0x17e   :  { %3466 = vmatpush1.bf16.msra.mxu0 %v5853_v13  ;;  %3810 = vmatpush1.bf16.msra.mxu1 %v5856_v16  ;;  %v5943_v13 = vld [vmem:[#allocation5 + $0x9c0] ss:$16 sps:$4 sm:$0xff]   ;;  %v5946_v16 = vld [vmem:[#allocation5 + $0x9c8] ss:$16 sps:$4 sm:$0xff]  }
 0x17f   :  { %3478 = vmatprep.subr.bf16.mxu0 %v5861_v17  ;;  %3822 = vmatprep.subr.bf16.mxu1 %v5864_v20  ;;  %v5951_v17 = vld [vmem:[#allocation5 + $0x9e4] ss:$16 sps:$4 sm:$0xff]   ;;  %v5954_v20 = vld [vmem:[#allocation5 + $0x9ec] ss:$16 sps:$4 sm:$0xff]  }
 0x181   :  { %3468 = vmatmul.mubr.bf16.vlgmr.msra.gmra.mrb[0].mxu0 %v4771_v22  ;;  %3812 = vmatmul.mubr.bf16.vlgmr.msra.gmra.mrb[0].mxu1 %v4771_v22  ;;  %v5949_v22 = vld [vmem:[#allocation5 + $0x9e0] ss:$16 sps:$4 sm:$0xff]  }
 0x182   :  { %3479 = vmatpush1.bf16.msra.mxu0 %v5859_v24  ;;  %3823 = vmatpush1.bf16.msra.mxu1 %v5862_v14  ;;  %v5952_v24 = vld [vmem:[#allocation5 + $0x9e8] ss:$16 sps:$4 sm:$0xff]   ;;  %v5957_v14 = vld [vmem:[#allocation5 + $0xa04] ss:$16 sps:$4 sm:$0xff]  }
 0x183   :  { %3480 = vmatprep.subr.bf16.mxu0 %v5867_v15  ;;  %3824 = vmatprep.subr.bf16.mxu1 %v5870_v25  ;;  %v5960_v15 = vld [vmem:[#allocation5 + $0xa0c] ss:$16 sps:$4 sm:$0xff]  }
 0x184   :  { %3510 = vmatprep.mubr.bf16.mxu0 %v4774_v26  ;;  %3854 = vmatprep.mubr.bf16.mxu1 %v4774_v26  ;;  %v6752_v25 = vld [vmem:[#allocation2 + $0x28] sm:$0xff] }
 0x185   :  { %v6754_v26 = vld [vmem:[#allocation2 + $0x68] sm:$0xff] }
 0x186   :  { %3481 = vmatpush1.bf16.msra.mxu0 %v5865_v27  ;;  %3825 = vmatpush1.bf16.msra.mxu1 %v5868_v28  ;;  %v4773_v27 = vcombine.low %v6744_v21, %v6748_v23  ;;  %v5955_v28 = vld [vmem:[#allocation5 + $0xa00] ss:$16 sps:$4 sm:$0xff]   ;;  %v5969_v21 = vld [vmem:[#allocation5 + $0xa44] ss:$16 sps:$4 sm:$0xff]   ;;  %v5972_v23 = vld [vmem:[#allocation5 + $0xa4c] ss:$16 sps:$4 sm:$0xff]  }
 0x187   :  { %3482 = vmatprep.subr.bf16.mxu0 %v5873_v18  ;;  %3826 = vmatprep.subr.bf16.mxu1 %v5876_v19  ;;  %v5958_v18 = vld [vmem:[#allocation5 + $0xa08] ss:$16 sps:$4 sm:$0xff]   ;;  %v5963_v19 = vld [vmem:[#allocation5 + $0xa24] ss:$16 sps:$4 sm:$0xff]  }
 0x18a   :  { %3483 = vmatpush1.bf16.msra.mxu0 %v5871_v29  ;;  %3827 = vmatpush1.bf16.msra.mxu1 %v5874_v30  ;;  %v5966_v29 = vld [vmem:[#allocation5 + $0xa2c] ss:$16 sps:$4 sm:$0xff]   ;;  %v4776_v30 = vcombine.high %v6752_v25, %v6754_v26 }
 0x18b   :  { %3484 = vmatprep.subr.bf16.mxu0 %v5879_v31  ;;  %3828 = vmatprep.subr.bf16.mxu1 %v5882_v32  ;;  %v5961_v31 = vld [vmem:[#allocation5 + $0xa20] ss:$16 sps:$4 sm:$0xff]   ;;  %v5964_v32 = vld [vmem:[#allocation5 + $0xa28] ss:$16 sps:$4 sm:$0xff]  }
 0x18e   :  { %3485 = vmatpush1.bf16.msra.mxu0 %v5877_v33  ;;  %3829 = vmatpush1.bf16.msra.mxu1 %v5880_v34  ;;  %v5967_v33 = vld [vmem:[#allocation5 + $0xa40] ss:$16 sps:$4 sm:$0xff]   ;;  %v5970_v34 = vld [vmem:[#allocation5 + $0xa48] ss:$16 sps:$4 sm:$0xff]  }
 0x18f   :  { %3486 = vmatprep.subr.bf16.mxu0 %v5885_v35  ;;  %3830 = vmatprep.subr.bf16.mxu1 %v5888_v36  ;;  %v5975_v35 = vld [vmem:[#allocation5 + $0xa64] ss:$16 sps:$4 sm:$0xff]   ;;  %v5978_v36 = vld [vmem:[#allocation5 + $0xa6c] ss:$16 sps:$4 sm:$0xff]  }
 0x192   :  { %3487 = vmatpush1.bf16.msra.mxu0 %v5883_v37  ;;  %3831 = vmatpush1.bf16.msra.mxu1 %v5886_v38  ;;  %v5973_v37 = vld [vmem:[#allocation5 + $0xa60] ss:$16 sps:$4 sm:$0xff]   ;;  %v5976_v38 = vld [vmem:[#allocation5 + $0xa68] ss:$16 sps:$4 sm:$0xff]  }
 0x193   :  { %3488 = vmatprep.subr.bf16.mxu0 %v5891_v39  ;;  %3832 = vmatprep.subr.bf16.mxu1 %v5894_v40  ;;  %v5981_v39 = vld [vmem:[#allocation5 + $0xa84] ss:$16 sps:$4 sm:$0xff]   ;;  %v5984_v40 = vld [vmem:[#allocation5 + $0xa8c] ss:$16 sps:$4 sm:$0xff]  }
 0x196   :  { %3489 = vmatpush1.bf16.msra.mxu0 %v5889_v41  ;;  %3833 = vmatpush1.bf16.msra.mxu1 %v5892_v42  ;;  %v5979_v41 = vld [vmem:[#allocation5 + $0xa80] ss:$16 sps:$4 sm:$0xff]   ;;  %v5982_v42 = vld [vmem:[#allocation5 + $0xa88] ss:$16 sps:$4 sm:$0xff]  }
 0x197   :  { %3490 = vmatprep.subr.bf16.mxu0 %v5897_v43  ;;  %3834 = vmatprep.subr.bf16.mxu1 %v5900_v44  ;;  %v5987_v43 = vld [vmem:[#allocation5 + $0xaa4] ss:$16 sps:$4 sm:$0xff]   ;;  %v5990_v44 = vld [vmem:[#allocation5 + $0xaac] ss:$16 sps:$4 sm:$0xff]  }
 0x19a   :  { %3491 = vmatpush1.bf16.msra.mxu0 %v5895_v45  ;;  %3835 = vmatpush1.bf16.msra.mxu1 %v5898_v46  ;;  %v5985_v45 = vld [vmem:[#allocation5 + $0xaa0] ss:$16 sps:$4 sm:$0xff]   ;;  %v5988_v46 = vld [vmem:[#allocation5 + $0xaa8] ss:$16 sps:$4 sm:$0xff]  }
 0x19b   :  { %3492 = vmatprep.subr.bf16.mxu0 %v5903_v47  ;;  %3836 = vmatprep.subr.bf16.mxu1 %v5906_v48  ;;  %v5993_v47 = vld [vmem:[#allocation5 + $0xac4] ss:$16 sps:$4 sm:$0xff]   ;;  %v5996_v48 = vld [vmem:[#allocation5 + $0xacc] ss:$16 sps:$4 sm:$0xff]  }
 0x19e   :  { %3493 = vmatpush1.bf16.msra.mxu0 %v5901_v49  ;;  %3837 = vmatpush1.bf16.msra.mxu1 %v5904_v50  ;;  %v5991_v49 = vld [vmem:[#allocation5 + $0xac0] ss:$16 sps:$4 sm:$0xff]   ;;  %v5994_v50 = vld [vmem:[#allocation5 + $0xac8] ss:$16 sps:$4 sm:$0xff]  }
 0x19f   :  { %3494 = vmatprep.subr.bf16.mxu0 %v5909_v51  ;;  %3838 = vmatprep.subr.bf16.mxu1 %v5912_v52  ;;  %v5999_v51 = vld [vmem:[#allocation5 + $0xae4] ss:$16 sps:$4 sm:$0xff]   ;;  %v6002_v52 = vld [vmem:[#allocation5 + $0xaec] ss:$16 sps:$4 sm:$0xff]  }
 0x1a2   :  { %3495 = vmatpush1.bf16.msra.mxu0 %v5907_v53  ;;  %3839 = vmatpush1.bf16.msra.mxu1 %v5910_v54  ;;  %v5997_v53 = vld [vmem:[#allocation5 + $0xae0] ss:$16 sps:$4 sm:$0xff]   ;;  %v6000_v54 = vld [vmem:[#allocation5 + $0xae8] ss:$16 sps:$4 sm:$0xff]  }
 0x1a3   :  { %3496 = vmatprep.subr.bf16.mxu0 %v5915_v55  ;;  %3840 = vmatprep.subr.bf16.mxu1 %v5918_v56  ;;  %v6005_v55 = vld [vmem:[#allocation5 + $0xb04] ss:$16 sps:$4 sm:$0xff]   ;;  %v6008_v56 = vld [vmem:[#allocation5 + $0xb0c] ss:$16 sps:$4 sm:$0xff]  }
 0x1a6   :  { %3497 = vmatpush1.bf16.msra.mxu0 %v5913_v57  ;;  %3841 = vmatpush1.bf16.msra.mxu1 %v5916_v58  ;;  %v6003_v57 = vld [vmem:[#allocation5 + $0xb00] ss:$16 sps:$4 sm:$0xff]   ;;  %v6006_v58 = vld [vmem:[#allocation5 + $0xb08] ss:$16 sps:$4 sm:$0xff]  }
 0x1a7   :  { %3498 = vmatprep.subr.bf16.mxu0 %v5921_v59  ;;  %3842 = vmatprep.subr.bf16.mxu1 %v5924_v60  ;;  %v6011_v59 = vld [vmem:[#allocation5 + $0xb24] ss:$16 sps:$4 sm:$0xff]   ;;  %v6014_v60 = vld [vmem:[#allocation5 + $0xb2c] ss:$16 sps:$4 sm:$0xff]  }
 0x1aa   :  { %3499 = vmatpush1.bf16.msra.mxu0 %v5919_v61  ;;  %3843 = vmatpush1.bf16.msra.mxu1 %v5922_v62  ;;  %v6009_v61 = vld [vmem:[#allocation5 + $0xb20] ss:$16 sps:$4 sm:$0xff]   ;;  %v6012_v62 = vld [vmem:[#allocation5 + $0xb28] ss:$16 sps:$4 sm:$0xff]  }
 0x1ab   :  { %3500 = vmatprep.subr.bf16.mxu0 %v5927_v63  ;;  %3844 = vmatprep.subr.bf16.mxu1 %v5930_v0  ;;  %v6017_v63 = vld [vmem:[#allocation5 + $0xb44] ss:$16 sps:$4 sm:$0xff]   ;;  %v6020_v0 = vld [vmem:[#allocation5 + $0xb4c] ss:$16 sps:$4 sm:$0xff]  }
 0x1ae   :  { %3501 = vmatpush1.bf16.msra.mxu0 %v5925_v1  ;;  %3845 = vmatpush1.bf16.msra.mxu1 %v5928_v2  ;;  %v6015_v1 = vld [vmem:[#allocation5 + $0xb40] ss:$16 sps:$4 sm:$0xff]   ;;  %v6018_v2 = vld [vmem:[#allocation5 + $0xb48] ss:$16 sps:$4 sm:$0xff]  }
 0x1af   :  { %3502 = vmatprep.subr.bf16.mxu0 %v5933_v3  ;;  %3846 = vmatprep.subr.bf16.mxu1 %v5936_v4  ;;  %v6023_v3 = vld [vmem:[#allocation5 + $0xb64] ss:$16 sps:$4 sm:$0xff]   ;;  %v6026_v4 = vld [vmem:[#allocation5 + $0xb6c] ss:$16 sps:$4 sm:$0xff]  }
 0x1b2   :  { %3503 = vmatpush1.bf16.msra.mxu0 %v5931_v5  ;;  %3847 = vmatpush1.bf16.msra.mxu1 %v5934_v6  ;;  %v6021_v5 = vld [vmem:[#allocation5 + $0xb60] ss:$16 sps:$4 sm:$0xff]   ;;  %v6024_v6 = vld [vmem:[#allocation5 + $0xb68] ss:$16 sps:$4 sm:$0xff]  }
 0x1b3   :  { %3504 = vmatprep.subr.bf16.mxu0 %v5939_v7  ;;  %3848 = vmatprep.subr.bf16.mxu1 %v5942_v8  ;;  %v6029_v7 = vld [vmem:[#allocation5 + $0xb84] ss:$16 sps:$4 sm:$0xff]   ;;  %v6032_v8 = vld [vmem:[#allocation5 + $0xb8c] ss:$16 sps:$4 sm:$0xff]  }
 0x1b6   :  { %3505 = vmatpush1.bf16.msra.mxu0 %v5937_v9  ;;  %3849 = vmatpush1.bf16.msra.mxu1 %v5940_v10  ;;  %v6027_v9 = vld [vmem:[#allocation5 + $0xb80] ss:$16 sps:$4 sm:$0xff]   ;;  %v6030_v10 = vld [vmem:[#allocation5 + $0xb88] ss:$16 sps:$4 sm:$0xff]  }
 0x1b7   :  { %3506 = vmatprep.subr.bf16.mxu0 %v5945_v11  ;;  %3850 = vmatprep.subr.bf16.mxu1 %v5948_v12  ;;  %v6035_v11 = vld [vmem:[#allocation5 + $0xba4] ss:$16 sps:$4 sm:$0xff]   ;;  %v6038_v12 = vld [vmem:[#allocation5 + $0xbac] ss:$16 sps:$4 sm:$0xff]  }
 0x1ba   :  { %3507 = vmatpush1.bf16.msra.mxu0 %v5943_v13  ;;  %3851 = vmatpush1.bf16.msra.mxu1 %v5946_v16  ;;  %v6033_v13 = vld [vmem:[#allocation5 + $0xba0] ss:$16 sps:$4 sm:$0xff]   ;;  %v6036_v16 = vld [vmem:[#allocation5 + $0xba8] ss:$16 sps:$4 sm:$0xff]  }
 0x1bb   :  { %3508 = vmatprep.subr.bf16.mxu0 %v5951_v17  ;;  %3852 = vmatprep.subr.bf16.mxu1 %v5954_v20  ;;  %v6041_v17 = vld [vmem:[#allocation5 + $0xbc4] ss:$16 sps:$4 sm:$0xff]   ;;  %v6044_v20 = vld [vmem:[#allocation5 + $0xbcc] ss:$16 sps:$4 sm:$0xff]  }
 0x1be   :  { %3509 = vmatpush1.bf16.msra.mxu0 %v5949_v22  ;;  %3853 = vmatpush1.bf16.msra.mxu1 %v5952_v24  ;;  %v6039_v22 = vld [vmem:[#allocation5 + $0xbc0] ss:$16 sps:$4 sm:$0xff]   ;;  %v6042_v24 = vld [vmem:[#allocation5 + $0xbc8] ss:$16 sps:$4 sm:$0xff]  }
 0x1bf   :  { %3521 = vmatprep.subr.bf16.mxu0 %v5957_v14  ;;  %3865 = vmatprep.subr.bf16.mxu1 %v5960_v15  ;;  %v6047_v14 = vld [vmem:[#allocation5 + $0xbe4] ss:$16 sps:$4 sm:$0xff]   ;;  %v6050_v15 = vld [vmem:[#allocation5 + $0xbec] ss:$16 sps:$4 sm:$0xff]  }
 0x1c1   :  { %3511 = vmatmul.mubr.bf16.vlgmr.msra.gmra.mrb[0].mxu0 %v4773_v27  ;;  %3855 = vmatmul.mubr.bf16.vlgmr.msra.gmra.mrb[0].mxu1 %v4773_v27  ;;  %v6045_v27 = vld [vmem:[#allocation5 + $0xbe0] ss:$16 sps:$4 sm:$0xff]  }
 0x1c2   :  { %3522 = vmatpush1.bf16.msra.mxu0 %v5955_v28  ;;  %3866 = vmatpush1.bf16.msra.mxu1 %v5958_v18  ;;  %v6048_v28 = vld [vmem:[#allocation5 + $0xbe8] ss:$16 sps:$4 sm:$0xff]   ;;  %v6053_v18 = vld [vmem:[#allocation5 + $0xc04] ss:$16 sps:$4 sm:$0xff]  }
 0x1c3   :  { %3523 = vmatprep.subr.bf16.mxu0 %v5963_v19  ;;  %3867 = vmatprep.subr.bf16.mxu1 %v5966_v29  ;;  %v6056_v19 = vld [vmem:[#allocation5 + $0xc0c] ss:$16 sps:$4 sm:$0xff]   ;;  %v4775_v29 = vcombine.low %v6752_v25, %v6754_v26  ;;  %v6057_v25 = vld [vmem:[#allocation5 + $0xc20] ss:$16 sps:$4 sm:$0xff]   ;;  %v6060_v26 = vld [vmem:[#allocation5 + $0xc28] ss:$16 sps:$4 sm:$0xff]  }
 0x1c4   :  { %3553 = vmatprep.mubr.bf16.mxu0 %v4776_v30  ;;  %3897 = vmatprep.mubr.bf16.mxu1 %v4776_v30  ;;  %v6762_v30 = vld [vmem:[#allocation2 + $0x30] sm:$0xff] }
 0x1c6   :  { %3524 = vmatpush1.bf16.msra.mxu0 %v5961_v31  ;;  %3868 = vmatpush1.bf16.msra.mxu1 %v5964_v32  ;;  %v6764_v31 = vld [vmem:[#allocation2 + $0x70] sm:$0xff] }
 0x1c7   :  { %3525 = vmatprep.subr.bf16.mxu0 %v5969_v21  ;;  %3869 = vmatprep.subr.bf16.mxu1 %v5972_v23  ;;  %v6051_v32 = vld [vmem:[#allocation5 + $0xc00] ss:$16 sps:$4 sm:$0xff]   ;;  %v6054_v21 = vld [vmem:[#allocation5 + $0xc08] ss:$16 sps:$4 sm:$0xff]   ;;  %v6059_v23 = vld [vmem:[#allocation5 + $0xc24] ss:$16 sps:$4 sm:$0xff]  }
 0x1ca   :  { %3526 = vmatpush1.bf16.msra.mxu0 %v5967_v33  ;;  %3870 = vmatpush1.bf16.msra.mxu1 %v5970_v34  ;;  %v6062_v33 = vld [vmem:[#allocation5 + $0xc2c] ss:$16 sps:$4 sm:$0xff]   ;;  %v4778_v34 = vcombine.high %v6762_v30, %v6764_v31 }
 0x1cb   :  { %3527 = vmatprep.subr.bf16.mxu0 %v5975_v35  ;;  %3871 = vmatprep.subr.bf16.mxu1 %v5978_v36  ;;  %v6065_v35 = vld [vmem:[#allocation5 + $0xc44] ss:$16 sps:$4 sm:$0xff]   ;;  %v6068_v36 = vld [vmem:[#allocation5 + $0xc4c] ss:$16 sps:$4 sm:$0xff]  }
 0x1ce   :  { %3528 = vmatpush1.bf16.msra.mxu0 %v5973_v37  ;;  %3872 = vmatpush1.bf16.msra.mxu1 %v5976_v38  ;;  %v6063_v37 = vld [vmem:[#allocation5 + $0xc40] ss:$16 sps:$4 sm:$0xff]   ;;  %v6066_v38 = vld [vmem:[#allocation5 + $0xc48] ss:$16 sps:$4 sm:$0xff]  }
 0x1cf   :  { %3529 = vmatprep.subr.bf16.mxu0 %v5981_v39  ;;  %3873 = vmatprep.subr.bf16.mxu1 %v5984_v40  ;;  %v6071_v39 = vld [vmem:[#allocation5 + $0xc64] ss:$16 sps:$4 sm:$0xff]   ;;  %v6074_v40 = vld [vmem:[#allocation5 + $0xc6c] ss:$16 sps:$4 sm:$0xff]  }
 0x1d2   :  { %3530 = vmatpush1.bf16.msra.mxu0 %v5979_v41  ;;  %3874 = vmatpush1.bf16.msra.mxu1 %v5982_v42  ;;  %v6069_v41 = vld [vmem:[#allocation5 + $0xc60] ss:$16 sps:$4 sm:$0xff]   ;;  %v6072_v42 = vld [vmem:[#allocation5 + $0xc68] ss:$16 sps:$4 sm:$0xff]  }
 0x1d3   :  { %3531 = vmatprep.subr.bf16.mxu0 %v5987_v43  ;;  %3875 = vmatprep.subr.bf16.mxu1 %v5990_v44  ;;  %v6077_v43 = vld [vmem:[#allocation5 + $0xc84] ss:$16 sps:$4 sm:$0xff]   ;;  %v6080_v44 = vld [vmem:[#allocation5 + $0xc8c] ss:$16 sps:$4 sm:$0xff]  }
 0x1d6   :  { %3532 = vmatpush1.bf16.msra.mxu0 %v5985_v45  ;;  %3876 = vmatpush1.bf16.msra.mxu1 %v5988_v46  ;;  %v6075_v45 = vld [vmem:[#allocation5 + $0xc80] ss:$16 sps:$4 sm:$0xff]   ;;  %v6078_v46 = vld [vmem:[#allocation5 + $0xc88] ss:$16 sps:$4 sm:$0xff]  }
 0x1d7   :  { %3533 = vmatprep.subr.bf16.mxu0 %v5993_v47  ;;  %3877 = vmatprep.subr.bf16.mxu1 %v5996_v48  ;;  %v6083_v47 = vld [vmem:[#allocation5 + $0xca4] ss:$16 sps:$4 sm:$0xff]   ;;  %v6086_v48 = vld [vmem:[#allocation5 + $0xcac] ss:$16 sps:$4 sm:$0xff]  }
 0x1da   :  { %3534 = vmatpush1.bf16.msra.mxu0 %v5991_v49  ;;  %3878 = vmatpush1.bf16.msra.mxu1 %v5994_v50  ;;  %v6081_v49 = vld [vmem:[#allocation5 + $0xca0] ss:$16 sps:$4 sm:$0xff]   ;;  %v6084_v50 = vld [vmem:[#allocation5 + $0xca8] ss:$16 sps:$4 sm:$0xff]  }
 0x1db   :  { %3535 = vmatprep.subr.bf16.mxu0 %v5999_v51  ;;  %3879 = vmatprep.subr.bf16.mxu1 %v6002_v52  ;;  %v6089_v51 = vld [vmem:[#allocation5 + $0xcc4] ss:$16 sps:$4 sm:$0xff]   ;;  %v6092_v52 = vld [vmem:[#allocation5 + $0xccc] ss:$16 sps:$4 sm:$0xff]  }
 0x1de   :  { %3536 = vmatpush1.bf16.msra.mxu0 %v5997_v53  ;;  %3880 = vmatpush1.bf16.msra.mxu1 %v6000_v54  ;;  %v6087_v53 = vld [vmem:[#allocation5 + $0xcc0] ss:$16 sps:$4 sm:$0xff]   ;;  %v6090_v54 = vld [vmem:[#allocation5 + $0xcc8] ss:$16 sps:$4 sm:$0xff]  }
 0x1df   :  { %3537 = vmatprep.subr.bf16.mxu0 %v6005_v55  ;;  %3881 = vmatprep.subr.bf16.mxu1 %v6008_v56  ;;  %v6095_v55 = vld [vmem:[#allocation5 + $0xce4] ss:$16 sps:$4 sm:$0xff]   ;;  %v6098_v56 = vld [vmem:[#allocation5 + $0xcec] ss:$16 sps:$4 sm:$0xff]  }
 0x1e2   :  { %3538 = vmatpush1.bf16.msra.mxu0 %v6003_v57  ;;  %3882 = vmatpush1.bf16.msra.mxu1 %v6006_v58  ;;  %v6093_v57 = vld [vmem:[#allocation5 + $0xce0] ss:$16 sps:$4 sm:$0xff]   ;;  %v6096_v58 = vld [vmem:[#allocation5 + $0xce8] ss:$16 sps:$4 sm:$0xff]  }
 0x1e3   :  { %3539 = vmatprep.subr.bf16.mxu0 %v6011_v59  ;;  %3883 = vmatprep.subr.bf16.mxu1 %v6014_v60  ;;  %v6101_v59 = vld [vmem:[#allocation5 + $0xd04] ss:$16 sps:$4 sm:$0xff]   ;;  %v6104_v60 = vld [vmem:[#allocation5 + $0xd0c] ss:$16 sps:$4 sm:$0xff]  }
 0x1e6   :  { %3540 = vmatpush1.bf16.msra.mxu0 %v6009_v61  ;;  %3884 = vmatpush1.bf16.msra.mxu1 %v6012_v62  ;;  %v6099_v61 = vld [vmem:[#allocation5 + $0xd00] ss:$16 sps:$4 sm:$0xff]   ;;  %v6102_v62 = vld [vmem:[#allocation5 + $0xd08] ss:$16 sps:$4 sm:$0xff]  }
 0x1e7   :  { %3541 = vmatprep.subr.bf16.mxu0 %v6017_v63  ;;  %3885 = vmatprep.subr.bf16.mxu1 %v6020_v0  ;;  %v6107_v63 = vld [vmem:[#allocation5 + $0xd24] ss:$16 sps:$4 sm:$0xff]   ;;  %v6110_v0 = vld [vmem:[#allocation5 + $0xd2c] ss:$16 sps:$4 sm:$0xff]  }
 0x1ea   :  { %3542 = vmatpush1.bf16.msra.mxu0 %v6015_v1  ;;  %3886 = vmatpush1.bf16.msra.mxu1 %v6018_v2  ;;  %v6105_v1 = vld [vmem:[#allocation5 + $0xd20] ss:$16 sps:$4 sm:$0xff]   ;;  %v6108_v2 = vld [vmem:[#allocation5 + $0xd28] ss:$16 sps:$4 sm:$0xff]  }
 0x1eb   :  { %3543 = vmatprep.subr.bf16.mxu0 %v6023_v3  ;;  %3887 = vmatprep.subr.bf16.mxu1 %v6026_v4  ;;  %v6113_v3 = vld [vmem:[#allocation5 + $0xd44] ss:$16 sps:$4 sm:$0xff]   ;;  %v6116_v4 = vld [vmem:[#allocation5 + $0xd4c] ss:$16 sps:$4 sm:$0xff]  }
 0x1ee   :  { %3544 = vmatpush1.bf16.msra.mxu0 %v6021_v5  ;;  %3888 = vmatpush1.bf16.msra.mxu1 %v6024_v6  ;;  %v6111_v5 = vld [vmem:[#allocation5 + $0xd40] ss:$16 sps:$4 sm:$0xff]   ;;  %v6114_v6 = vld [vmem:[#allocation5 + $0xd48] ss:$16 sps:$4 sm:$0xff]  }
 0x1ef   :  { %3545 = vmatprep.subr.bf16.mxu0 %v6029_v7  ;;  %3889 = vmatprep.subr.bf16.mxu1 %v6032_v8  ;;  %v6119_v7 = vld [vmem:[#allocation5 + $0xd64] ss:$16 sps:$4 sm:$0xff]   ;;  %v6122_v8 = vld [vmem:[#allocation5 + $0xd6c] ss:$16 sps:$4 sm:$0xff]  }
 0x1f2   :  { %3546 = vmatpush1.bf16.msra.mxu0 %v6027_v9  ;;  %3890 = vmatpush1.bf16.msra.mxu1 %v6030_v10  ;;  %v6117_v9 = vld [vmem:[#allocation5 + $0xd60] ss:$16 sps:$4 sm:$0xff]   ;;  %v6120_v10 = vld [vmem:[#allocation5 + $0xd68] ss:$16 sps:$4 sm:$0xff]  }
 0x1f3   :  { %3547 = vmatprep.subr.bf16.mxu0 %v6035_v11  ;;  %3891 = vmatprep.subr.bf16.mxu1 %v6038_v12  ;;  %v6125_v11 = vld [vmem:[#allocation5 + $0xd84] ss:$16 sps:$4 sm:$0xff]   ;;  %v6128_v12 = vld [vmem:[#allocation5 + $0xd8c] ss:$16 sps:$4 sm:$0xff]  }
 0x1f6   :  { %3548 = vmatpush1.bf16.msra.mxu0 %v6033_v13  ;;  %3892 = vmatpush1.bf16.msra.mxu1 %v6036_v16  ;;  %v6123_v13 = vld [vmem:[#allocation5 + $0xd80] ss:$16 sps:$4 sm:$0xff]   ;;  %v6126_v16 = vld [vmem:[#allocation5 + $0xd88] ss:$16 sps:$4 sm:$0xff]  }
 0x1f7   :  { %3549 = vmatprep.subr.bf16.mxu0 %v6041_v17  ;;  %3893 = vmatprep.subr.bf16.mxu1 %v6044_v20  ;;  %v6131_v17 = vld [vmem:[#allocation5 + $0xda4] ss:$16 sps:$4 sm:$0xff]   ;;  %v6134_v20 = vld [vmem:[#allocation5 + $0xdac] ss:$16 sps:$4 sm:$0xff]  }
 0x1fa   :  { %3550 = vmatpush1.bf16.msra.mxu0 %v6039_v22  ;;  %3894 = vmatpush1.bf16.msra.mxu1 %v6042_v24  ;;  %v6129_v22 = vld [vmem:[#allocation5 + $0xda0] ss:$16 sps:$4 sm:$0xff]   ;;  %v6132_v24 = vld [vmem:[#allocation5 + $0xda8] ss:$16 sps:$4 sm:$0xff]  }
 0x1fb   :  { %3551 = vmatprep.subr.bf16.mxu0 %v6047_v14  ;;  %3895 = vmatprep.subr.bf16.mxu1 %v6050_v15  ;;  %v6137_v14 = vld [vmem:[#allocation5 + $0xdc4] ss:$16 sps:$4 sm:$0xff]   ;;  %v6140_v15 = vld [vmem:[#allocation5 + $0xdcc] ss:$16 sps:$4 sm:$0xff]  }
 0x1fe   :  { %3552 = vmatpush1.bf16.msra.mxu0 %v6045_v27  ;;  %3896 = vmatpush1.bf16.msra.mxu1 %v6048_v28  ;;  %v6135_v27 = vld [vmem:[#allocation5 + $0xdc0] ss:$16 sps:$4 sm:$0xff]   ;;  %v6138_v28 = vld [vmem:[#allocation5 + $0xdc8] ss:$16 sps:$4 sm:$0xff]  }
 0x1ff   :  { %3564 = vmatprep.subr.bf16.mxu0 %v6053_v18  ;;  %3908 = vmatprep.subr.bf16.mxu1 %v6056_v19  ;;  %v6143_v18 = vld [vmem:[#allocation5 + $0xde4] ss:$16 sps:$4 sm:$0xff]   ;;  %v6146_v19 = vld [vmem:[#allocation5 + $0xdec] ss:$16 sps:$4 sm:$0xff]  }
 0x201   :  { %3554 = vmatmul.mubr.bf16.vlgmr.msra.gmra.mrb[0].mxu0 %v4775_v29  ;;  %3898 = vmatmul.mubr.bf16.vlgmr.msra.gmra.mrb[0].mxu1 %v4775_v29  ;;  %v6141_v29 = vld [vmem:[#allocation5 + $0xde0] ss:$16 sps:$4 sm:$0xff]  }
 0x202   :  { %3565 = vmatpush1.bf16.msra.mxu0 %v6051_v32  ;;  %3909 = vmatpush1.bf16.msra.mxu1 %v6054_v21  ;;  %v6144_v32 = vld [vmem:[#allocation5 + $0xde8] ss:$16 sps:$4 sm:$0xff]   ;;  %v6149_v21 = vld [vmem:[#allocation5 + $0xe04] ss:$16 sps:$4 sm:$0xff]  }
 0x203   :  { %3566 = vmatprep.subr.bf16.mxu0 %v6059_v23  ;;  %3910 = vmatprep.subr.bf16.mxu1 %v6062_v33  ;;  %v6152_v23 = vld [vmem:[#allocation5 + $0xe0c] ss:$16 sps:$4 sm:$0xff]   ;;  %v4777_v33 = vcombine.low %v6762_v30, %v6764_v31  ;;  %v6153_v30 = vld [vmem:[#allocation5 + $0xe20] ss:$16 sps:$4 sm:$0xff]   ;;  %v6156_v31 = vld [vmem:[#allocation5 + $0xe28] ss:$16 sps:$4 sm:$0xff]  }
 0x204   :  { %3596 = vmatprep.mubr.bf16.mxu0 %v4778_v34  ;;  %3940 = vmatprep.mubr.bf16.mxu1 %v4778_v34  ;;  %v6770_v34 = vld [vmem:[#allocation2 + $0x38] sm:$0xff] }
 0x206   :  { %3567 = vmatpush1.bf16.msra.mxu0 %v6057_v25  ;;  %3911 = vmatpush1.bf16.msra.mxu1 %v6060_v26  ;;  %v6772_v25 = vld [vmem:[#allocation2 + $0x78] sm:$0xff]  ;;  %v6147_v26 = vld [vmem:[#allocation5 + $0xe00] ss:$16 sps:$4 sm:$0xff]  }
 0x207   :  { %3568 = vmatprep.subr.bf16.mxu0 %v6065_v35  ;;  %3912 = vmatprep.subr.bf16.mxu1 %v6068_v36  ;;  %v6150_v35 = vld [vmem:[#allocation5 + $0xe08] ss:$16 sps:$4 sm:$0xff]   ;;  %v6155_v36 = vld [vmem:[#allocation5 + $0xe24] ss:$16 sps:$4 sm:$0xff]  }
 0x20a   :  { %3569 = vmatpush1.bf16.msra.mxu0 %v6063_v37  ;;  %3913 = vmatpush1.bf16.msra.mxu1 %v6066_v38  ;;  %v6158_v37 = vld [vmem:[#allocation5 + $0xe2c] ss:$16 sps:$4 sm:$0xff]   ;;  %v4780_v38 = vcombine.high %v6770_v34, %v6772_v25 }
 0x20b   :  { %3570 = vmatprep.subr.bf16.mxu0 %v6071_v39  ;;  %3914 = vmatprep.subr.bf16.mxu1 %v6074_v40  ;;  %v6161_v39 = vld [vmem:[#allocation5 + $0xe44] ss:$16 sps:$4 sm:$0xff]   ;;  %v6164_v40 = vld [vmem:[#allocation5 + $0xe4c] ss:$16 sps:$4 sm:$0xff]  }
 0x20e   :  { %3571 = vmatpush1.bf16.msra.mxu0 %v6069_v41  ;;  %3915 = vmatpush1.bf16.msra.mxu1 %v6072_v42  ;;  %v6159_v41 = vld [vmem:[#allocation5 + $0xe40] ss:$16 sps:$4 sm:$0xff]   ;;  %v6162_v42 = vld [vmem:[#allocation5 + $0xe48] ss:$16 sps:$4 sm:$0xff]  }
 0x20f   :  { %3572 = vmatprep.subr.bf16.mxu0 %v6077_v43  ;;  %3916 = vmatprep.subr.bf16.mxu1 %v6080_v44  ;;  %v6167_v43 = vld [vmem:[#allocation5 + $0xe64] ss:$16 sps:$4 sm:$0xff]   ;;  %v6170_v44 = vld [vmem:[#allocation5 + $0xe6c] ss:$16 sps:$4 sm:$0xff]  }
 0x212   :  { %3573 = vmatpush1.bf16.msra.mxu0 %v6075_v45  ;;  %3917 = vmatpush1.bf16.msra.mxu1 %v6078_v46  ;;  %v6165_v45 = vld [vmem:[#allocation5 + $0xe60] ss:$16 sps:$4 sm:$0xff]   ;;  %v6168_v46 = vld [vmem:[#allocation5 + $0xe68] ss:$16 sps:$4 sm:$0xff]  }
 0x213   :  { %3574 = vmatprep.subr.bf16.mxu0 %v6083_v47  ;;  %3918 = vmatprep.subr.bf16.mxu1 %v6086_v48  ;;  %v6173_v47 = vld [vmem:[#allocation5 + $0xe84] ss:$16 sps:$4 sm:$0xff]   ;;  %v6176_v48 = vld [vmem:[#allocation5 + $0xe8c] ss:$16 sps:$4 sm:$0xff]  }
 0x216   :  { %3575 = vmatpush1.bf16.msra.mxu0 %v6081_v49  ;;  %3919 = vmatpush1.bf16.msra.mxu1 %v6084_v50  ;;  %v6171_v49 = vld [vmem:[#allocation5 + $0xe80] ss:$16 sps:$4 sm:$0xff]   ;;  %v6174_v50 = vld [vmem:[#allocation5 + $0xe88] ss:$16 sps:$4 sm:$0xff]  }
 0x217   :  { %3576 = vmatprep.subr.bf16.mxu0 %v6089_v51  ;;  %3920 = vmatprep.subr.bf16.mxu1 %v6092_v52  ;;  %v6179_v51 = vld [vmem:[#allocation5 + $0xea4] ss:$16 sps:$4 sm:$0xff]   ;;  %v6182_v52 = vld [vmem:[#allocation5 + $0xeac] ss:$16 sps:$4 sm:$0xff]  }
 0x21a   :  { %3577 = vmatpush1.bf16.msra.mxu0 %v6087_v53  ;;  %3921 = vmatpush1.bf16.msra.mxu1 %v6090_v54  ;;  %v6177_v53 = vld [vmem:[#allocation5 + $0xea0] ss:$16 sps:$4 sm:$0xff]   ;;  %v6180_v54 = vld [vmem:[#allocation5 + $0xea8] ss:$16 sps:$4 sm:$0xff]  }
 0x21b   :  { %3578 = vmatprep.subr.bf16.mxu0 %v6095_v55  ;;  %3922 = vmatprep.subr.bf16.mxu1 %v6098_v56  ;;  %v6185_v55 = vld [vmem:[#allocation5 + $0xec4] ss:$16 sps:$4 sm:$0xff]   ;;  %v6188_v56 = vld [vmem:[#allocation5 + $0xecc] ss:$16 sps:$4 sm:$0xff]  }
 0x21e   :  { %3579 = vmatpush1.bf16.msra.mxu0 %v6093_v57  ;;  %3923 = vmatpush1.bf16.msra.mxu1 %v6096_v58  ;;  %v6183_v57 = vld [vmem:[#allocation5 + $0xec0] ss:$16 sps:$4 sm:$0xff]   ;;  %v6186_v58 = vld [vmem:[#allocation5 + $0xec8] ss:$16 sps:$4 sm:$0xff]  }
 0x21f   :  { %3580 = vmatprep.subr.bf16.mxu0 %v6101_v59  ;;  %3924 = vmatprep.subr.bf16.mxu1 %v6104_v60  ;;  %v6191_v59 = vld [vmem:[#allocation5 + $0xee4] ss:$16 sps:$4 sm:$0xff]   ;;  %v6194_v60 = vld [vmem:[#allocation5 + $0xeec] ss:$16 sps:$4 sm:$0xff]  }
 0x222   :  { %3581 = vmatpush1.bf16.msra.mxu0 %v6099_v61  ;;  %3925 = vmatpush1.bf16.msra.mxu1 %v6102_v62  ;;  %v6189_v61 = vld [vmem:[#allocation5 + $0xee0] ss:$16 sps:$4 sm:$0xff]   ;;  %v6192_v62 = vld [vmem:[#allocation5 + $0xee8] ss:$16 sps:$4 sm:$0xff]  }
 0x223   :  { %3582 = vmatprep.subr.bf16.mxu0 %v6107_v63  ;;  %3926 = vmatprep.subr.bf16.mxu1 %v6110_v0  ;;  %v6197_v63 = vld [vmem:[#allocation5 + $0xf04] ss:$16 sps:$4 sm:$0xff]   ;;  %v6200_v0 = vld [vmem:[#allocation5 + $0xf0c] ss:$16 sps:$4 sm:$0xff]  }
 0x226   :  { %3583 = vmatpush1.bf16.msra.mxu0 %v6105_v1  ;;  %3927 = vmatpush1.bf16.msra.mxu1 %v6108_v2  ;;  %v6195_v1 = vld [vmem:[#allocation5 + $0xf00] ss:$16 sps:$4 sm:$0xff]   ;;  %v6198_v2 = vld [vmem:[#allocation5 + $0xf08] ss:$16 sps:$4 sm:$0xff]  }
 0x227   :  { %3584 = vmatprep.subr.bf16.mxu0 %v6113_v3  ;;  %3928 = vmatprep.subr.bf16.mxu1 %v6116_v4  ;;  %v6203_v3 = vld [vmem:[#allocation5 + $0xf24] ss:$16 sps:$4 sm:$0xff]   ;;  %v6206_v4 = vld [vmem:[#allocation5 + $0xf2c] ss:$16 sps:$4 sm:$0xff]  }
 0x22a   :  { %3585 = vmatpush1.bf16.msra.mxu0 %v6111_v5  ;;  %3929 = vmatpush1.bf16.msra.mxu1 %v6114_v6  ;;  %v6201_v5 = vld [vmem:[#allocation5 + $0xf20] ss:$16 sps:$4 sm:$0xff]   ;;  %v6204_v6 = vld [vmem:[#allocation5 + $0xf28] ss:$16 sps:$4 sm:$0xff]  }
 0x22b   :  { %3586 = vmatprep.subr.bf16.mxu0 %v6119_v7  ;;  %3930 = vmatprep.subr.bf16.mxu1 %v6122_v8  ;;  %v6209_v7 = vld [vmem:[#allocation5 + $0xf44] ss:$16 sps:$4 sm:$0xff]   ;;  %v6212_v8 = vld [vmem:[#allocation5 + $0xf4c] ss:$16 sps:$4 sm:$0xff]  }
 0x22e   :  { %3587 = vmatpush1.bf16.msra.mxu0 %v6117_v9  ;;  %3931 = vmatpush1.bf16.msra.mxu1 %v6120_v10  ;;  %v6207_v9 = vld [vmem:[#allocation5 + $0xf40] ss:$16 sps:$4 sm:$0xff]   ;;  %v6210_v10 = vld [vmem:[#allocation5 + $0xf48] ss:$16 sps:$4 sm:$0xff]  }
 0x22f   :  { %3588 = vmatprep.subr.bf16.mxu0 %v6125_v11  ;;  %3932 = vmatprep.subr.bf16.mxu1 %v6128_v12  ;;  %v6215_v11 = vld [vmem:[#allocation5 + $0xf64] ss:$16 sps:$4 sm:$0xff]   ;;  %v6218_v12 = vld [vmem:[#allocation5 + $0xf6c] ss:$16 sps:$4 sm:$0xff]  }
 0x232   :  { %3589 = vmatpush1.bf16.msra.mxu0 %v6123_v13  ;;  %3933 = vmatpush1.bf16.msra.mxu1 %v6126_v16  ;;  %v6213_v13 = vld [vmem:[#allocation5 + $0xf60] ss:$16 sps:$4 sm:$0xff]   ;;  %v6216_v16 = vld [vmem:[#allocation5 + $0xf68] ss:$16 sps:$4 sm:$0xff]  }
 0x233   :  { %3590 = vmatprep.subr.bf16.mxu0 %v6131_v17  ;;  %3934 = vmatprep.subr.bf16.mxu1 %v6134_v20  ;;  %v6221_v17 = vld [vmem:[#allocation5 + $0xf84] ss:$16 sps:$4 sm:$0xff]   ;;  %v6224_v20 = vld [vmem:[#allocation5 + $0xf8c] ss:$16 sps:$4 sm:$0xff]  }
 0x236   :  { %3591 = vmatpush1.bf16.msra.mxu0 %v6129_v22  ;;  %3935 = vmatpush1.bf16.msra.mxu1 %v6132_v24  ;;  %v6219_v22 = vld [vmem:[#allocation5 + $0xf80] ss:$16 sps:$4 sm:$0xff]   ;;  %v6222_v24 = vld [vmem:[#allocation5 + $0xf88] ss:$16 sps:$4 sm:$0xff]  }
 0x237   :  { %3592 = vmatprep.subr.bf16.mxu0 %v6137_v14  ;;  %3936 = vmatprep.subr.bf16.mxu1 %v6140_v15  ;;  %v6227_v14 = vld [vmem:[#allocation5 + $0xfa4] ss:$16 sps:$4 sm:$0xff]   ;;  %v6230_v15 = vld [vmem:[#allocation5 + $0xfac] ss:$16 sps:$4 sm:$0xff]  }
 0x23a   :  { %3593 = vmatpush1.bf16.msra.mxu0 %v6135_v27  ;;  %3937 = vmatpush1.bf16.msra.mxu1 %v6138_v28  ;;  %v6225_v27 = vld [vmem:[#allocation5 + $0xfa0] ss:$16 sps:$4 sm:$0xff]   ;;  %v6228_v28 = vld [vmem:[#allocation5 + $0xfa8] ss:$16 sps:$4 sm:$0xff]  }
 0x23b   :  { %3594 = vmatprep.subr.bf16.mxu0 %v6143_v18  ;;  %3938 = vmatprep.subr.bf16.mxu1 %v6146_v19  ;;  %v6233_v18 = vld [vmem:[#allocation5 + $0xfc4] ss:$16 sps:$4 sm:$0xff]   ;;  %v6236_v19 = vld [vmem:[#allocation5 + $0xfcc] ss:$16 sps:$4 sm:$0xff]  }
 0x23e   :  { %3595 = vmatpush1.bf16.msra.mxu0 %v6141_v29  ;;  %3939 = vmatpush1.bf16.msra.mxu1 %v6144_v32  ;;  %v6231_v29 = vld [vmem:[#allocation5 + $0xfc0] ss:$16 sps:$4 sm:$0xff]   ;;  %v6234_v32 = vld [vmem:[#allocation5 + $0xfc8] ss:$16 sps:$4 sm:$0xff]  }
 0x23f   :  { %3607 = vmatprep.subr.bf16.mxu0 %v6149_v21  ;;  %3951 = vmatprep.subr.bf16.mxu1 %v6152_v23  ;;  %v6239_v21 = vld [vmem:[#allocation5 + $0xfe4] ss:$16 sps:$4 sm:$0xff]   ;;  %v6242_v23 = vld [vmem:[#allocation5 + $0xfec] ss:$16 sps:$4 sm:$0xff]  }
 0x241   :  { %3597 = vmatmul.mubr.bf16.vlgmr.msra.gmra.mrb[0].mxu0 %v4777_v33  ;;  %3941 = vmatmul.mubr.bf16.vlgmr.msra.gmra.mrb[0].mxu1 %v4777_v33  ;;  %v6237_v33 = vld [vmem:[#allocation5 + $0xfe0] ss:$16 sps:$4 sm:$0xff]  }
 0x242   :  { %3608 = vmatpush1.bf16.msra.mxu0 %v6147_v26  ;;  %3952 = vmatpush1.bf16.msra.mxu1 %v6150_v35  ;;  %v6240_v26 = vld [vmem:[#allocation5 + $0xfe8] ss:$16 sps:$4 sm:$0xff]  }
 0x243   :  { %3609 = vmatprep.subr.bf16.mxu0 %v6155_v36  ;;  %3953 = vmatprep.subr.bf16.mxu1 %v6158_v37  ;;  %v6245_v35 = vld [vmem:[#allocation8 + $0x4] ss:$8 sps:$4 sm:$0xff]   ;;  %v4779_v36 = vcombine.low %v6770_v34, %v6772_v25  ;;  %v6243_v37 = vld [vmem:[#allocation8] ss:$8 sps:$4 sm:$0xff]   ;;  %v6260_v25 = vld [vmem:[#allocation8 + $0x54] ss:$8 sps:$4 sm:$0xff]  }
 0x244   :  { %3639 = vmatprep.mubr.bf16.mxu0 %v4780_v38  ;;  %3983 = vmatprep.mubr.bf16.mxu1 %v4780_v38  ;;  %v6248_v38 = vld [vmem:[#allocation8 + $0x14] ss:$8 sps:$4 sm:$0xff]   ;;  %v6255_v34 = vld [vmem:[#allocation8 + $0x40] ss:$8 sps:$4 sm:$0xff]  }
 0x246   :  { %3610 = vmatpush1.bf16.msra.mxu0 %v6153_v30  ;;  %3954 = vmatpush1.bf16.msra.mxu1 %v6156_v31  ;;  %v6246_v30 = vld [vmem:[#allocation8 + $0x10] ss:$8 sps:$4 sm:$0xff]   ;;  %v6251_v31 = vld [vmem:[#allocation8 + $0x24] ss:$8 sps:$4 sm:$0xff]  }
 0x247   :  { %3611 = vmatprep.subr.bf16.mxu0 %v6161_v39  ;;  %3955 = vmatprep.subr.bf16.mxu1 %v6164_v40  ;;  %v6249_v39 = vld [vmem:[#allocation8 + $0x20] ss:$8 sps:$4 sm:$0xff]   ;;  %v6254_v40 = vld [vmem:[#allocation8 + $0x34] ss:$8 sps:$4 sm:$0xff]  }
 0x24a   :  { %3612 = vmatpush1.bf16.msra.mxu0 %v6159_v41  ;;  %3956 = vmatpush1.bf16.msra.mxu1 %v6162_v42  ;;  %v6252_v41 = vld [vmem:[#allocation8 + $0x30] ss:$8 sps:$4 sm:$0xff]   ;;  %v6257_v42 = vld [vmem:[#allocation8 + $0x44] ss:$8 sps:$4 sm:$0xff]  }
 0x24b   :  { %3613 = vmatprep.subr.bf16.mxu0 %v6167_v43  ;;  %3957 = vmatprep.subr.bf16.mxu1 %v6170_v44  ;;  %v6258_v43 = vld [vmem:[#allocation8 + $0x50] ss:$8 sps:$4 sm:$0xff]   ;;  %v6263_v44 = vld [vmem:[#allocation8 + $0x64] ss:$8 sps:$4 sm:$0xff]  }
 0x24e   :  { %3614 = vmatpush1.bf16.msra.mxu0 %v6165_v45  ;;  %3958 = vmatpush1.bf16.msra.mxu1 %v6168_v46  ;;  %v6261_v45 = vld [vmem:[#allocation8 + $0x60] ss:$8 sps:$4 sm:$0xff]   ;;  %v6266_v46 = vld [vmem:[#allocation8 + $0x74] ss:$8 sps:$4 sm:$0xff]  }
 0x24f   :  { %3615 = vmatprep.subr.bf16.mxu0 %v6173_v47  ;;  %3959 = vmatprep.subr.bf16.mxu1 %v6176_v48  ;;  %v6264_v47 = vld [vmem:[#allocation8 + $0x70] ss:$8 sps:$4 sm:$0xff]   ;;  %v6269_v48 = vld [vmem:[#allocation8 + $0x84] ss:$8 sps:$4 sm:$0xff]  }
 0x252   :  { %3616 = vmatpush1.bf16.msra.mxu0 %v6171_v49  ;;  %3960 = vmatpush1.bf16.msra.mxu1 %v6174_v50  ;;  %v6267_v49 = vld [vmem:[#allocation8 + $0x80] ss:$8 sps:$4 sm:$0xff]   ;;  %v6272_v50 = vld [vmem:[#allocation8 + $0x94] ss:$8 sps:$4 sm:$0xff]  }
 0x253   :  { %3617 = vmatprep.subr.bf16.mxu0 %v6179_v51  ;;  %3961 = vmatprep.subr.bf16.mxu1 %v6182_v52  ;;  %v6270_v51 = vld [vmem:[#allocation8 + $0x90] ss:$8 sps:$4 sm:$0xff]   ;;  %v6275_v52 = vld [vmem:[#allocation8 + $0xa4] ss:$8 sps:$4 sm:$0xff]  }
 0x256   :  { %3618 = vmatpush1.bf16.msra.mxu0 %v6177_v53  ;;  %3962 = vmatpush1.bf16.msra.mxu1 %v6180_v54  ;;  %v6273_v53 = vld [vmem:[#allocation8 + $0xa0] ss:$8 sps:$4 sm:$0xff]   ;;  %v6278_v54 = vld [vmem:[#allocation8 + $0xb4] ss:$8 sps:$4 sm:$0xff]  }
 0x257   :  { %3619 = vmatprep.subr.bf16.mxu0 %v6185_v55  ;;  %3963 = vmatprep.subr.bf16.mxu1 %v6188_v56  ;;  %v6276_v55 = vld [vmem:[#allocation8 + $0xb0] ss:$8 sps:$4 sm:$0xff]   ;;  %v6281_v56 = vld [vmem:[#allocation8 + $0xc4] ss:$8 sps:$4 sm:$0xff]  }
 0x25a   :  { %3620 = vmatpush1.bf16.msra.mxu0 %v6183_v57  ;;  %3964 = vmatpush1.bf16.msra.mxu1 %v6186_v58  ;;  %v6279_v57 = vld [vmem:[#allocation8 + $0xc0] ss:$8 sps:$4 sm:$0xff]   ;;  %v6284_v58 = vld [vmem:[#allocation8 + $0xd4] ss:$8 sps:$4 sm:$0xff]  }
 0x25b   :  { %3621 = vmatprep.subr.bf16.mxu0 %v6191_v59  ;;  %3965 = vmatprep.subr.bf16.mxu1 %v6194_v60  ;;  %v6282_v59 = vld [vmem:[#allocation8 + $0xd0] ss:$8 sps:$4 sm:$0xff]   ;;  %v6287_v60 = vld [vmem:[#allocation8 + $0xe4] ss:$8 sps:$4 sm:$0xff]  }
 0x25e   :  { %3622 = vmatpush1.bf16.msra.mxu0 %v6189_v61  ;;  %3966 = vmatpush1.bf16.msra.mxu1 %v6192_v62  ;;  %v6285_v61 = vld [vmem:[#allocation8 + $0xe0] ss:$8 sps:$4 sm:$0xff]   ;;  %v6290_v62 = vld [vmem:[#allocation8 + $0xf4] ss:$8 sps:$4 sm:$0xff]  }
 0x25f   :  { %3623 = vmatprep.subr.bf16.mxu0 %v6197_v63  ;;  %3967 = vmatprep.subr.bf16.mxu1 %v6200_v0  ;;  %v6288_v63 = vld [vmem:[#allocation8 + $0xf0] ss:$8 sps:$4 sm:$0xff]   ;;  %v6293_v0 = vld [vmem:[#allocation8 + $0x104] ss:$8 sps:$4 sm:$0xff]  }
 0x262   :  { %3624 = vmatpush1.bf16.msra.mxu0 %v6195_v1  ;;  %3968 = vmatpush1.bf16.msra.mxu1 %v6198_v2  ;;  %v6339_v1 = vld [vmem:[#allocation11] ss:$8 sps:$4 sm:$0xff]   ;;  %v6341_v2 = vld [vmem:[#allocation11 + $0x4] ss:$8 sps:$4 sm:$0xff]  }
 0x263   :  { %3625 = vmatprep.subr.bf16.mxu0 %v6203_v3  ;;  %3969 = vmatprep.subr.bf16.mxu1 %v6206_v4  ;;  %v6344_v3 = vld [vmem:[#allocation11 + $0x14] ss:$8 sps:$4 sm:$0xff]   ;;  %v6342_v4 = vld [vmem:[#allocation11 + $0x10] ss:$8 sps:$4 sm:$0xff]  }
 0x266   :  { %3626 = vmatpush1.bf16.msra.mxu0 %v6201_v5  ;;  %3970 = vmatpush1.bf16.msra.mxu1 %v6204_v6  ;;  %v6347_v5 = vld [vmem:[#allocation11 + $0x24] ss:$8 sps:$4 sm:$0xff]   ;;  %v6345_v6 = vld [vmem:[#allocation11 + $0x20] ss:$8 sps:$4 sm:$0xff]  }
 0x267   :  { %3627 = vmatprep.subr.bf16.mxu0 %v6209_v7  ;;  %3971 = vmatprep.subr.bf16.mxu1 %v6212_v8  ;;  %v6350_v7 = vld [vmem:[#allocation11 + $0x34] ss:$8 sps:$4 sm:$0xff]   ;;  %v6348_v8 = vld [vmem:[#allocation11 + $0x30] ss:$8 sps:$4 sm:$0xff]  }
 0x26a   :  { %3628 = vmatpush1.bf16.msra.mxu0 %v6207_v9  ;;  %3972 = vmatpush1.bf16.msra.mxu1 %v6210_v10  ;;  %v6353_v9 = vld [vmem:[#allocation11 + $0x44] ss:$8 sps:$4 sm:$0xff]   ;;  %v6351_v10 = vld [vmem:[#allocation11 + $0x40] ss:$8 sps:$4 sm:$0xff]  }
 0x26b   :  { %3629 = vmatprep.subr.bf16.mxu0 %v6215_v11  ;;  %3973 = vmatprep.subr.bf16.mxu1 %v6218_v12  ;;  %v6356_v11 = vld [vmem:[#allocation11 + $0x54] ss:$8 sps:$4 sm:$0xff]   ;;  %v6354_v12 = vld [vmem:[#allocation11 + $0x50] ss:$8 sps:$4 sm:$0xff]  }
 0x26e   :  { %3630 = vmatpush1.bf16.msra.mxu0 %v6213_v13  ;;  %3974 = vmatpush1.bf16.msra.mxu1 %v6216_v16  ;;  %v6359_v13 = vld [vmem:[#allocation11 + $0x64] ss:$8 sps:$4 sm:$0xff]   ;;  %v6357_v16 = vld [vmem:[#allocation11 + $0x60] ss:$8 sps:$4 sm:$0xff]  }
 0x26f   :  { %3631 = vmatprep.subr.bf16.mxu0 %v6221_v17  ;;  %3975 = vmatprep.subr.bf16.mxu1 %v6224_v20  ;;  %v6362_v17 = vld [vmem:[#allocation11 + $0x74] ss:$8 sps:$4 sm:$0xff]   ;;  %v6360_v20 = vld [vmem:[#allocation11 + $0x70] ss:$8 sps:$4 sm:$0xff]  }
 0x272   :  { %3632 = vmatpush1.bf16.msra.mxu0 %v6219_v22  ;;  %3976 = vmatpush1.bf16.msra.mxu1 %v6222_v24  ;;  %v6365_v22 = vld [vmem:[#allocation11 + $0x84] ss:$8 sps:$4 sm:$0xff]   ;;  %v6363_v24 = vld [vmem:[#allocation11 + $0x80] ss:$8 sps:$4 sm:$0xff]  }
 0x273   :  { %3633 = vmatprep.subr.bf16.mxu0 %v6227_v14  ;;  %3977 = vmatprep.subr.bf16.mxu1 %v6230_v15  ;;  %v6368_v14 = vld [vmem:[#allocation11 + $0x94] ss:$8 sps:$4 sm:$0xff]   ;;  %v6366_v15 = vld [vmem:[#allocation11 + $0x90] ss:$8 sps:$4 sm:$0xff]  }
 0x276   :  { %3634 = vmatpush1.bf16.msra.mxu0 %v6225_v27  ;;  %3978 = vmatpush1.bf16.msra.mxu1 %v6228_v28  ;;  %v6371_v27 = vld [vmem:[#allocation11 + $0xa4] ss:$8 sps:$4 sm:$0xff]   ;;  %v646_v28 = vlaneseq }
 0x277   :  { %3635 = vmatprep.subr.bf16.mxu0 %v6233_v18  ;;  %3979 = vmatprep.subr.bf16.mxu1 %v6236_v19  ;;  %v6369_v18 = vld [vmem:[#allocation11 + $0xa0] ss:$8 sps:$4 sm:$0xff]   ;;  %v6374_v19 = vld [vmem:[#allocation11 + $0xb4] ss:$8 sps:$4 sm:$0xff]  }
 0x27a   :  { %3636 = vmatpush1.bf16.msra.mxu0 %v6231_v29  ;;  %3980 = vmatpush1.bf16.msra.mxu1 %v6234_v32  ;;  %v647_v29 = vshrl.u32 %v646_v28, 7  ;;  %v6372_v32 = vld [vmem:[#allocation11 + $0xb0] ss:$8 sps:$4 sm:$0xff]  }
 0x27b   :  { %3637 = vmatprep.subr.bf16.mxu0 %v6239_v21  ;;  %3981 = vmatprep.subr.bf16.mxu1 %v6242_v23  ;;  %v6377_v21 = vld [vmem:[#allocation11 + $0xc4] ss:$8 sps:$4 sm:$0xff]  }
 0x27c   :  { %v6778_v23 = vsub.s32 0, %v647_v29  ;;  %v6318_v28 = vld [vmem:[#allocation8 + $0x190] ss:$8 sps:$4 sm:$0xff]  }
 0x27e   :  { %3638 = vmatpush1.bf16.msra.mxu0 %v6237_v33  ;;  %3982 = vmatpush1.bf16.msra.mxu1 %v6240_v26  ;;  %v656_v33 = vsub.s32 2, %v647_v29  ;;  %v644_v26 = vld [vmem:[#allocation7] sm:$0xf] }
 0x27f   :  { %4402 = vmatprep.subr.bf16.mxu0 %v6245_v35  ;;  %4698 = vmatprep.subr.bf16.mxu1 %v6341_v2  ;;  %v6780_v35 = vsub.s32 1, %v647_v29 }
 0x281   :  { %3640 = vmatmul.mubr.bf16.vlgmr.msra.gmra.mrb[0].mxu0 %v4779_v36  ;;  %3984 = vmatmul.mubr.bf16.vlgmr.msra.gmra.mrb[0].mxu1 %v4779_v36  ;;  %v660_v36 = vsub.s32 3, %v647_v29  ;;  %v6326_v29 = vld [vmem:[#allocation8 + $0x1b4] ss:$8 sps:$4 sm:$0xff]  }
 0x282   :  { %4403 = vmatpush1.bf16.msra.mxu0 %v6243_v37  ;;  %4699 = vmatpush1.bf16.msra.mxu1 %v6339_v1  ;;  %v6375_v37 = vld [vmem:[#allocation11 + $0xc0] ss:$8 sps:$4 sm:$0xff]  }
 0x283   :  { %4404 = vmatprep.subr.bf16.mxu0 %v6248_v38  ;;  %4700 = vmatprep.subr.bf16.mxu1 %v6344_v3  ;;  %v6380_v38 = vld [vmem:[#allocation11 + $0xd4] ss:$8 sps:$4 sm:$0xff]  }
 0x286   :  { %4405 = vmatpush1.bf16.msra.mxu0 %v6246_v30  ;;  %4701 = vmatpush1.bf16.msra.mxu1 %v6342_v4  ;;  %v649_v30 = vrot.slane %v644_v26, %v6778_v23  ;;  %v6291_v4 = vld [vmem:[#allocation8 + $0x100] ss:$8 sps:$4 sm:$0xff]  }
 0x287   :  { %4406 = vmatprep.subr.bf16.mxu0 %v6251_v31  ;;  %4702 = vmatprep.subr.bf16.mxu1 %v6347_v5  ;;  %v657_v31 = vrot.slane %v644_v26, %v656_v33  ;;  %v6296_v5 = vld [vmem:[#allocation8 + $0x114] ss:$8 sps:$4 sm:$0xff]   ;;  %v6327_v33 = vld [vmem:[#allocation8 + $0x1c0] ss:$8 sps:$4 sm:$0xff]  }
 0x28a   :  { %4407 = vmatpush1.bf16.msra.mxu0 %v6249_v39  ;;  %4703 = vmatpush1.bf16.msra.mxu1 %v6345_v6  ;;  %v653_v39 = vrot.slane %v644_v26, %v6780_v35  ;;  %v6294_v6 = vld [vmem:[#allocation8 + $0x110] ss:$8 sps:$4 sm:$0xff]  }
 0x28b   :  { %4408 = vmatprep.subr.bf16.mxu0 %v6254_v40  ;;  %4704 = vmatprep.subr.bf16.mxu1 %v6350_v7  ;;  %v661_v40 = vrot.slane %v644_v26, %v660_v36  ;;  %v6299_v7 = vld [vmem:[#allocation8 + $0x124] ss:$8 sps:$4 sm:$0xff]   ;;  %v6332_v26 = vld [vmem:[#allocation8 + $0x1d4] ss:$8 sps:$4 sm:$0xff]   ;;  %v6330_v36 = vld [vmem:[#allocation8 + $0x1d0] ss:$8 sps:$4 sm:$0xff]  }
 0x28e   :  { %4409 = vmatpush1.bf16.msra.mxu0 %v6252_v41  ;;  %4705 = vmatpush1.bf16.msra.mxu1 %v6348_v8  ;;  %v6378_v41 = vld [vmem:[#allocation11 + $0xd0] ss:$8 sps:$4 sm:$0xff]   ;;  %v6297_v8 = vld [vmem:[#allocation8 + $0x120] ss:$8 sps:$4 sm:$0xff]  }
 0x28f   :  { %4410 = vmatprep.subr.bf16.mxu0 %v6257_v42  ;;  %4706 = vmatprep.subr.bf16.mxu1 %v6353_v9  ;;  %v6302_v9 = vld [vmem:[#allocation8 + $0x134] ss:$8 sps:$4 sm:$0xff]  }
 0x292   :  { %4411 = vmatpush1.bf16.msra.mxu0 %v6255_v34  ;;  %4707 = vmatpush1.bf16.msra.mxu1 %v6351_v10  ;;  %v6300_v10 = vld [vmem:[#allocation8 + $0x130] ss:$8 sps:$4 sm:$0xff]  }
 0x293   :  { %4412 = vmatprep.subr.bf16.mxu0 %v6260_v25  ;;  %4708 = vmatprep.subr.bf16.mxu1 %v6356_v11  ;;  %v6305_v11 = vld [vmem:[#allocation8 + $0x144] ss:$8 sps:$4 sm:$0xff]  }
 0x296   :  { %4413 = vmatpush1.bf16.msra.mxu0 %v6258_v43  ;;  %4709 = vmatpush1.bf16.msra.mxu1 %v6354_v12  ;;  %v6303_v12 = vld [vmem:[#allocation8 + $0x140] ss:$8 sps:$4 sm:$0xff]  }
 0x297   :  { %4414 = vmatprep.subr.bf16.mxu0 %v6263_v44  ;;  %4710 = vmatprep.subr.bf16.mxu1 %v6359_v13  ;;  %v6308_v13 = vld [vmem:[#allocation8 + $0x154] ss:$8 sps:$4 sm:$0xff]  }
 0x29a   :  { %4415 = vmatpush1.bf16.msra.mxu0 %v6261_v45  ;;  %4711 = vmatpush1.bf16.msra.mxu1 %v6357_v16  ;;  %v6306_v16 = vld [vmem:[#allocation8 + $0x150] ss:$8 sps:$4 sm:$0xff]  }
 0x29b   :  { %4416 = vmatprep.subr.bf16.mxu0 %v6266_v46  ;;  %4712 = vmatprep.subr.bf16.mxu1 %v6362_v17  ;;  %v6311_v17 = vld [vmem:[#allocation8 + $0x164] ss:$8 sps:$4 sm:$0xff]  }
 0x29e   :  { %4417 = vmatpush1.bf16.msra.mxu0 %v6264_v47  ;;  %4713 = vmatpush1.bf16.msra.mxu1 %v6360_v20  ;;  %v6309_v20 = vld [vmem:[#allocation8 + $0x160] ss:$8 sps:$4 sm:$0xff]  }
 0x29f   :  { %4418 = vmatprep.subr.bf16.mxu0 %v6269_v48  ;;  %4714 = vmatprep.subr.bf16.mxu1 %v6365_v22  ;;  %v6314_v22 = vld [vmem:[#allocation8 + $0x174] ss:$8 sps:$4 sm:$0xff]  }
 0x2a2   :  { %4419 = vmatpush1.bf16.msra.mxu0 %v6267_v49  ;;  %4715 = vmatpush1.bf16.msra.mxu1 %v6363_v24  ;;  %v6312_v24 = vld [vmem:[#allocation8 + $0x170] ss:$8 sps:$4 sm:$0xff]  }
 0x2a3   :  { %4420 = vmatprep.subr.bf16.mxu0 %v6272_v50  ;;  %4716 = vmatprep.subr.bf16.mxu1 %v6368_v14  ;;  %v6317_v14 = vld [vmem:[#allocation8 + $0x184] ss:$8 sps:$4 sm:$0xff]  }
 0x2a6   :  { %4421 = vmatpush1.bf16.msra.mxu0 %v6270_v51  ;;  %4717 = vmatpush1.bf16.msra.mxu1 %v6366_v15  ;;  %v6315_v15 = vld [vmem:[#allocation8 + $0x180] ss:$8 sps:$4 sm:$0xff]  }
 0x2a7   :  { %4422 = vmatprep.subr.bf16.mxu0 %v6275_v52  ;;  %4718 = vmatprep.subr.bf16.mxu1 %v6371_v27  ;;  %v6320_v27 = vld [vmem:[#allocation8 + $0x194] ss:$8 sps:$4 sm:$0xff]  }
 0x2aa   :  { %4423 = vmatpush1.bf16.msra.mxu0 %v6273_v53  ;;  %4719 = vmatpush1.bf16.msra.mxu1 %v6369_v18  ;;  %v6323_v18 = vld [vmem:[#allocation8 + $0x1a4] ss:$8 sps:$4 sm:$0xff]  }
 0x2ab   :  { %4424 = vmatprep.subr.bf16.mxu0 %v6278_v54  ;;  %4720 = vmatprep.subr.bf16.mxu1 %v6374_v19  ;;  %v6321_v19 = vld [vmem:[#allocation8 + $0x1a0] ss:$8 sps:$4 sm:$0xff]  }
 0x2ae   :  { %4425 = vmatpush1.bf16.msra.mxu0 %v6276_v55  ;;  %4721 = vmatpush1.bf16.msra.mxu1 %v6372_v32  ;;  %v6324_v32 = vld [vmem:[#allocation8 + $0x1b0] ss:$8 sps:$4 sm:$0xff]  }
 0x2af   :  { %4426 = vmatprep.subr.bf16.mxu0 %v6281_v56  ;;  %4722 = vmatprep.subr.bf16.mxu1 %v6377_v21  ;;  %v6329_v21 = vld [vmem:[#allocation8 + $0x1c4] ss:$8 sps:$4 sm:$0xff]  }
 0x2b2   :  { %4427 = vmatpush1.bf16.msra.mxu0 %v6279_v57  ;;  %4723 = vmatpush1.bf16.msra.mxu1 %v6375_v37  ;;  %v6335_v37 = vld [vmem:[#allocation8 + $0x1e4] ss:$8 sps:$4 sm:$0xff]  }
 0x2b3   :  { %4428 = vmatprep.subr.bf16.mxu0 %v6284_v58  ;;  %4724 = vmatprep.subr.bf16.mxu1 %v6380_v38  ;;  %v6333_v38 = vld [vmem:[#allocation8 + $0x1e0] ss:$8 sps:$4 sm:$0xff]  }
 0x2b6   :  { %4429 = vmatpush1.bf16.msra.mxu0 %v6282_v59  ;;  %4725 = vmatpush1.bf16.msra.mxu1 %v6378_v41  ;;  %v6386_v41 = vld [vmem:[#allocation11 + $0xf4] ss:$8 sps:$4 sm:$0xff]  }
 0x2b7   :  { %4430 = vmatprep.subr.bf16.mxu0 %v6287_v60 }
 0x2ba   :  { %4431 = vmatpush1.bf16.msra.mxu0 %v6285_v61 }
 0x2bb   :  { %4432 = vmatprep.subr.bf16.mxu0 %v6290_v62 }
 0x2be   :  { %4433 = vmatpush1.bf16.msra.mxu0 %v6288_v63 }
 0x2bf   :  { %4445 = vmatprep.subr.bf16.mxu0 %v6293_v0 }
 0x354   :  { %v3641_v42 = vpop.f32.mrb[0].mxu0  ;;  %v3985_v34 = vpop.f32.mrb[0].mxu1 }
 0x355   :  { %v5389_v25 = vadd.f32 %v3641_v42, %v649_v30  ;;  %v5393_v43 = vadd.f32 %v3985_v34, %v657_v31  ;;  %v3643_v44 = vpop.f32.mrb[1].mxu0  ;;  %v3987_v45 = vpop.f32.mrb[1].mxu1  ;;  %v6384_v42 = vld [vmem:[#allocation11 + $0xf0] ss:$8 sps:$4 sm:$0xff]   ;;  %v4070_v34 = vld [vmem:[#allocation10] sm:$0x3] }
 0x356   :  { %v5390_v46 = vadd.f32 %v3643_v44, %v653_v39  ;;  %v5394_v47 = vadd.f32 %v3987_v45, %v661_v40  ;;  %v3645_v48 = vpop.f32.mrb[2].mxu0  ;;  %v3989_v49 = vpop.f32.mrb[2].mxu1 }
 0x357   :  { %v5391_v50 = vadd.f32 %v3645_v48, %v649_v30  ;;  %v5395_v51 = vadd.f32 %v3989_v49, %v657_v31  ;;  %v3647_v52 = vpop.f32.mrb[3].mxu0  ;;  %v3991_v53 = vpop.f32.mrb[3].mxu1  ;;  %v3994_v56 = vmax.f32 %v5389_v25, 0.0  ;;  %v3996_v57 = vmax.f32 %v5393_v43, 0.0  ;;  %v6338_v30 = vld [vmem:[#allocation8 + $0x1f4] ss:$8 sps:$4 sm:$0xff]  }
 0x358   :  { %v5392_v54 = vadd.f32 %v3647_v52, %v653_v39  ;;  %v5396_v55 = vadd.f32 %v3991_v53, %v661_v40  ;;  %v3995_v60 = vmax.f32 %v5390_v46, 0.0  ;;  %v3997_v61 = vmax.f32 %v5394_v47, 0.0  ;;  %v6336_v31 = vld [vmem:[#allocation8 + $0x1f0] ss:$8 sps:$4 sm:$0xff]   ;;  %v6381_v40 = vld [vmem:[#allocation11 + $0xe0] ss:$8 sps:$4 sm:$0xff]  }
 0x359   :  { %v3998_v58 = vmax.f32 %v5391_v50, 0.0  ;;  %v4000_v59 = vmax.f32 %v5395_v51, 0.0  ;;  %v6383_v39 = vld [vmem:[#allocation11 + $0xe4] ss:$8 sps:$4 sm:$0xff]   ;;  %v4075_v25 = vrot.slane %v4070_v34, %v6778_v23  ;;  %v4079_v43 = vrot.slane %v4070_v34, %v6780_v35 }
 0x35a   :  { %v3999_v62 = vmax.f32 %v5392_v54, 0.0  ;;  %v4001_v63 = vmax.f32 %v5396_v55, 0.0  ;;  %4726 = vmatprep.subr.bf16.mxu1 %v6383_v39 }
 0x35b   :  { %v4002_v0 = vpack.c.bf16 %v3998_v58, %v3994_v56  ;;  %v6784_v1 = vpack.c.bf16 %v4000_v59, %v3996_v57  ;;  %4727 = vmatpush1.bf16.msra.mxu1 %v6381_v40  ;;  %v4526_v58 = vld [vmem:[#allocation13] sm:$0x3] }
 0x35c   :  { %v4003_v2 = vpack.c.bf16 %v3999_v62, %v3995_v60  ;;  %v4005_v3 = vpack.c.bf16 %v4001_v63, %v3997_v61  ;;  %4728 = vmatprep.subr.bf16.mxu1 %v6386_v41  ;;  %v4531_v59 = vrot.slane %v4526_v58, %v6778_v23  ;;  %v4535_v60 = vrot.slane %v4526_v58, %v6780_v35 }
 0x35e   :  { %4434 = vmatprep.mubr.bf16.mxu0 %v4003_v2 }
 0x35f   :  { %4435 = vmatmul.mubr.bf16.vlgmr.msra.gmra.mrb[4].mxu0 %v4002_v0  ;;  %4729 = vmatpush1.bf16.msra.mxu1 %v6384_v42 }
 0x360   :  { %4446 = vmatpush1.bf16.msra.mxu0 %v6291_v4  ;;  %4477 = vmatprep.mubr.bf16.mxu0 %v4005_v3 }
 0x361   :  { %4447 = vmatprep.subr.bf16.mxu0 %v6296_v5 }
 0x364   :  { %4448 = vmatpush1.bf16.msra.mxu0 %v6294_v6 }
 0x365   :  { %4449 = vmatprep.subr.bf16.mxu0 %v6299_v7 }
 0x368   :  { %4450 = vmatpush1.bf16.msra.mxu0 %v6297_v8 }
 0x369   :  { %4451 = vmatprep.subr.bf16.mxu0 %v6302_v9 }
 0x36c   :  { %4452 = vmatpush1.bf16.msra.mxu0 %v6300_v10 }
 0x36d   :  { %4453 = vmatprep.subr.bf16.mxu0 %v6305_v11 }
 0x370   :  { %4454 = vmatpush1.bf16.msra.mxu0 %v6303_v12 }
 0x371   :  { %4455 = vmatprep.subr.bf16.mxu0 %v6308_v13 }
 0x374   :  { %4456 = vmatpush1.bf16.msra.mxu0 %v6306_v16 }
 0x375   :  { %4457 = vmatprep.subr.bf16.mxu0 %v6311_v17 }
 0x378   :  { %4458 = vmatpush1.bf16.msra.mxu0 %v6309_v20 }
 0x379   :  { %4459 = vmatprep.subr.bf16.mxu0 %v6314_v22 }
 0x37c   :  { %4460 = vmatpush1.bf16.msra.mxu0 %v6312_v24 }
 0x37d   :  { %4461 = vmatprep.subr.bf16.mxu0 %v6317_v14 }
 0x380   :  { %4462 = vmatpush1.bf16.msra.mxu0 %v6315_v15 }
 0x381   :  { %4463 = vmatprep.subr.bf16.mxu0 %v6320_v27 }
 0x384   :  { %4464 = vmatpush1.bf16.msra.mxu0 %v6318_v28 }
 0x385   :  { %4465 = vmatprep.subr.bf16.mxu0 %v6323_v18 }
 0x388   :  { %4466 = vmatpush1.bf16.msra.mxu0 %v6321_v19 }
 0x389   :  { %4467 = vmatprep.subr.bf16.mxu0 %v6326_v29 }
 0x38c   :  { %4468 = vmatpush1.bf16.msra.mxu0 %v6324_v32 }
 0x38d   :  { %4469 = vmatprep.subr.bf16.mxu0 %v6329_v21 }
 0x390   :  { %4470 = vmatpush1.bf16.msra.mxu0 %v6327_v33 }
 0x391   :  { %4471 = vmatprep.subr.bf16.mxu0 %v6332_v26 }
 0x394   :  { %4472 = vmatpush1.bf16.msra.mxu0 %v6330_v36 }
 0x395   :  { %4473 = vmatprep.subr.bf16.mxu0 %v6335_v37 }
 0x398   :  { %4474 = vmatpush1.bf16.msra.mxu0 %v6333_v38 }
 0x399   :  { %4475 = vmatprep.subr.bf16.mxu0 %v6338_v30 }
 0x39c   :  { %4476 = vmatpush1.bf16.msra.mxu0 %v6336_v31 }
 0x39f   :  { %4478 = vmatmul.mubr.bf16.vlgmr.msra.gmra.mrb[4].mxu0 %v6784_v1 }
 0x472   :  { %v4479_v44 = vpop.f32.mrb[4].mxu0 }
 0x473   :  { %v5397_v45 = vadd.f32 %v4479_v44, %v4075_v25  ;;  %v4481_v46 = vpop.f32.mrb[5].mxu0 }
 0x474   :  { %v5398_v47 = vadd.f32 %v4481_v46, %v4079_v43  ;;  %v4483_v48 = vpop.f32.mrb[6].mxu0 }
 0x475   :  { %v5399_v49 = vadd.f32 %v4483_v48, %v4075_v25  ;;  %v4485_v50 = vpop.f32.mrb[7].mxu0  ;;  %v4488_v52 = vmax.f32 %v5397_v45, 0.0 }
 0x476   :  { %v5400_v51 = vadd.f32 %v4485_v50, %v4079_v43  ;;  %v4489_v54 = vmax.f32 %v5398_v47, 0.0 }
 0x477   :  { %v4490_v53 = vmax.f32 %v5399_v49, 0.0 }
 0x478   :  { %v4491_v55 = vmax.f32 %v5400_v51, 0.0 }
 0x479   :  { %v4492_v56 = vpack.c.bf16 %v4490_v53, %v4488_v52 }
 0x47a   :  { %v4493_v57 = vpack.c.bf16 %v4491_v55, %v4489_v54 }
 0x47c   :  { %4730 = vmatprep.mubr.bf16.mxu1 %v4493_v57 }
 0x47d   :  { %4731 = vmatmul.mubr.bf16.vlgmr.msra.gmra.mrb[4].mxu1 %v4492_v56 }
 0x550   :  { %v4732_v61 = vpop.f32.mrb[4].mxu1 }
 0x551   :  { %v4733_v62 = vadd.f32 %v4732_v61, %v4531_v59  ;;  %v4734_v63 = vpop.f32.mrb[5].mxu1 }
 0x552   :  { %v4735_v0 = vadd.f32 %v4734_v63, %v4535_v60  ;;  %v4736_v1 = vpop.f32.mrb[6].mxu1 }
 0x553   :  { %4741 = vst [vmem:[#allocation14] sm:$0xff] %v4733_v62  ;;  %v4737_v2 = vadd.f32 %v4736_v1, %v4531_v59  ;;  %v4738_v3 = vpop.f32.mrb[7].mxu1 }
 0x554   :  { %4742 = vst [vmem:[#allocation14 + $0x8] sm:$0xff] %v4735_v0  ;;  %v4739_v4 = vadd.f32 %v4738_v3, %v4535_v60 }
 0x555   :  { %4743 = vst [vmem:[#allocation14 + $0x10] sm:$0xff] %v4737_v2 }
 0x556   :  { %4744 = vst [vmem:[#allocation14 + $0x18] sm:$0xff] %v4739_v4 }
 0x557   :  { %4749 = vsyncadd [#allocation4], 256  ;;  %s6586_s6 = smov [#allocation14]  }
 0x558   :  { %s4750_s19 = sshll.u32 %s6586_s6, 4  ;;  %s4751_s19 = int_to_ptr.vmem [resolvable:$true] %s4750_s19 }
 0x559   :  { %s6541_s20 = scalar_lea.vmem %s4751_s19, 256  ;;  %s6545_s0 = scalar_lea.vmem %s4751_s19, 512 }
 0x55a   :  { %p6542_p0 = scmp.ne.s32.totalorder %s4751_s19, %s6541_s20  ;;  %p6546_p1 = scmp.lt.s32.totalorder %s4751_s19, %s4751_s19 }
 0x55b   :  { %p6547_p2 = scmp.lt.s32.totalorder %s6545_s0, %s6541_s20 }
 0x55d   :  { %p6548_p3 = por %p6547_p2, %p6546_p1 }
 0x55f   :  { %p6549_p4 = pnand %p6548_p3, %p6542_p0 }
 0x561   :  { %6552 = shalt.err (!%p6549_p4)
}
 0x562   :  { %s6553_s22 = scalar_lea.hbm %s6813_s7, 256 }
 0x563   :  { %p6554_p5 = scmp.ne.s32.totalorder %s6813_s7, %s6553_s22  ;;  %p6557_p6 = scmp.lt.u32.totalorder %s6553_s22, %s6813_s7 }
 0x565   :  { %p6559_p7 = pnand %p6557_p6, %p6554_p5 }
 0x567   :  { %6562 = shalt.err (!%p6559_p7)
}
 0x568   :  { %4756 = dma.vmem_to_hbm [thread:$0]  %s4751_s19, 256, %s6813_s7, [#allocation4], %s6574_s11, %s6574_s11, %s6575_s12  }
 0x569   :  { %6571 = dma.done.wait [#allocation4], 512  }
 0x56a   :  { %6572 = vsyncadd [#allocation4], 4294966784 }
 0x56b   :  { %4760 = vsyncpa [#allocation3], 1 }
 0x56c   :  { %4761 = vsyncpa [#allocation6], 1 }
 0x56d   :  { %4762 = vsyncpa [#allocation9], 1 }
 0x56e   :  { %4763 = vsyncpa [#allocation12], 1 }
 0x56f   :  { %4764 = vsyncpa [#allocation4], 1 }

</bundles_post_ra>
